<compile_context>
chip_gen: v7x
topology: tpu7x:2x2x1
jax: 0.10.0
libtpu: 0.0.40
codegen_flags: <defaults>
</compile_context>

<pallas_src>
import functools

import jax
import jax.numpy as jnp
from jax.experimental import pallas as pl
from jax.experimental.pallas import tpu as pltpu

_BN_EPS = 1e-5
_VMEM_LIMIT_BYTES = 48 * 1024 * 1024   # above every default scoped budget, < v7x physical


def _pick_row_tile(h, w, max_rows=2048):
    """Largest divisor TH of h with TH*w <= max_rows and TH % 8 == 0 (or TH == h).

    Prefers >= 2 row-tiles per image so BlockSpec double-buffering has steps to overlap.
    """
    best = h
    for d in range(h, 0, -1):
        if h % d:
            continue
        if d % 8 and d != h:
            continue
        if d * w <= max_rows:
            best = d
            break
    if best == h and h > 1:
        for d in range(h // 2, 0, -1):
            if h % d == 0 and d % 8 == 0 and d * w <= max_rows:
                return d
    return best


def _conv_stats_kernel(x_ref, w_ref, conv_ref, stats_ref, col_ref, *, th):
    """3x3 conv for one TH-row tile of one image + per-image channel statistics.

    x_ref    : (1, H+2, W+2, Cin) bf16  zero-padded image (resident across row tiles)
    w_ref    : (9*Cin, Cout)      bf16  conv weights with the 9 taps folded into K
    conv_ref : (1, TH, W, Cout)   bf16  conv output tile
    stats_ref: (1, 2, Cout)       f32   per-image [sum; sum_sq] accumulator (over rows)
    col_ref  : (TH*W, 9*Cin)      bf16  im2col scratch
    """
    r = pl.program_id(1)
    _, hp, wp, cin = x_ref.shape
    w = wp - 2
    cout = stats_ref.shape[-1]

    @pl.when(r == 0)
    def _():
        stats_ref[...] = jnp.zeros_like(stats_ref)

    row0 = r * th
    if th % 8 == 0:
        row0 = pl.multiple_of(row0, 8)

    # im2col: 9 shifted taps -> K = 9*Cin columns -> a single bf16 MXU matmul.
    # Taps are sliced straight from the (pre-padded) input ref: no halo copy pass.
    for t in range(9):
        ky, kx = divmod(t, 3)
        patch = x_ref[0, pl.ds(row0 + ky, th), kx:kx + w, :]          # (TH, W, Cin) bf16
        col_ref[:, t * cin:(t + 1) * cin] = patch.reshape(th * w, cin)

    conv = jnp.dot(col_ref[...], w_ref[...],
                   preferred_element_type=jnp.float32)                # (TH*W, Cout) f32

    # BN statistics (kept in f32): sublane reductions ride XLU/VPU slots that are idle
    # while the MXU computes -- no more M=1 ones-vector matmuls through the MXU.
    stats_ref[0, 0:1, :] += jnp.sum(conv, axis=0, keepdims=True)
    stats_ref[0, 1:2, :] += jnp.sum(conv * conv, axis=0, keepdims=True)

    # bf16 intermediate halves the dominant HBM traffic (written once, read once).
    # Block covers the full (W, Cout) trailing dims -> contiguous HBM writeback.
    conv_ref[...] = conv.reshape(1, th, w, cout).astype(conv_ref.dtype)


def _bn_relu_kernel(conv_ref, scale_ref, shift_ref, o_ref):
    """BatchNorm affine + ReLU on a lane-dense (TH, W*Cout) slab (pure FMA, HBM-bound).

    conv_ref : (1, TH, W*Cout) bf16
    scale_ref: (1, W*Cout)     f32   gamma / sqrt(var + eps), folded to the lane layout
    shift_ref: (1, W*Cout)     f32   beta - mean * scale, folded to the lane layout
    o_ref    : (1, TH, W*Cout) f32
    """
    x = conv_ref[...].astype(jnp.float32)
    o_ref[...] = jnp.maximum(x * scale_ref[...] + shift_ref[...], 0.0)


@jax.jit
def conv_bn_relu(x_nchw, w_oihw, conv_bias, gamma, beta):
    """ConvBNRelu forward (NCHW in / NCHW out, matching the PyTorch module)."""
    del conv_bias  # cancels exactly in training-mode BatchNorm's mean subtraction
    n, cin, h, w = x_nchw.shape
    cout = w_oihw.shape[0]
    th = _pick_row_tile(h, w)
    n_row_tiles = h // th

    # TODO(synk): in a full HiDDeN stack keep activations NHWC between layers and drop
    # these boundary transposes (kept here only to match the PyTorch NCHW interface).
    x_nhwc = jnp.transpose(x_nchw, (0, 2, 3, 1)).astype(jnp.float32)
    # Pre-pad the 1-pixel halo once in HBM (cheap vs. conv output traffic) and cast to
    # bf16 so input DMA / VMEM residency are halved.
    x_pad = jnp.pad(x_nhwc, ((0, 0), (1, 1), (1, 1), (0, 0))).astype(jnp.bfloat16)
    # TODO(synk): for Cin << 128 a lane-folded (N, H+2, (W+2)*Cin) input layout would
    # avoid the Cin->128 lane padding of the resident image; kept NHWC for robust taps.
    # OIHW -> HWIO -> (9*Cin, Cout); row order (ky, kx, ci) matches the im2col order.
    w_k = jnp.transpose(w_oihw, (2, 3, 1, 0)).astype(jnp.bfloat16).reshape(9 * cin, cout)

    # ---- Pass 1: bf16 conv matmul + fused per-image channel statistics --------------
    conv_raw, stats_part = pl.pallas_call(
        functools.partial(_conv_stats_kernel, th=th),
        grid=(n, n_row_tiles),
        in_specs=[
            pl.BlockSpec((1, h + 2, w + 2, cin), lambda i, r: (i, 0, 0, 0)),
            pl.BlockSpec((9 * cin, cout), lambda i, r: (0, 0)),
        ],
        out_specs=(
            pl.BlockSpec((1, th, w, cout), lambda i, r: (i, r, 0, 0)),
            pl.BlockSpec((1, 2, cout), lambda i, r: (i, 0, 0)),  # per-image accumulator
        ),
        out_shape=(
            jax.ShapeDtypeStruct((n, h, w, cout), jnp.bfloat16),
            jax.ShapeDtypeStruct((n, 2, cout), jnp.float32),
        ),
        scratch_shapes=[pltpu.VMEM((th * w, 9 * cin), jnp.bfloat16)],
        compiler_params=pltpu.CompilerParams(
            # Batch axis "parallel" (per-image stat partials -> v7x dual-TC safe);
            # row-tile axis "arbitrary" because stats accumulate across it.
            dimension_semantics=("parallel", "arbitrary"),
            vmem_limit_bytes=_VMEM_LIMIT_BYTES,
        ),
    )(x_pad, w_k)

    # ---- Global BN affine (tiny, wrapper-side; hoisted out of the pass-2 kernel) ----
    stats = jnp.sum(stats_part, axis=0)                              # (2, Cout)
    count = float(n * h * w)
    mean = stats[0] / count
    var = stats[1] / count - mean * mean                             # biased variance
    inv_std = jax.lax.rsqrt(var + _BN_EPS)
    scale = gamma.astype(jnp.float32) * inv_std
    shift = beta.astype(jnp.float32) - mean * scale
    scale_w = jnp.tile(scale, w).reshape(1, w * cout)                # folded lane layout
    shift_w = jnp.tile(shift, w).reshape(1, w * cout)

    # Free contiguous re-view in HBM: fold W into the lane axis for a lane-dense pass 2.
    conv_ld = conv_raw.reshape(n, h, w * cout)

    # ---- Pass 2: BatchNorm + ReLU --------------------------------------------------
    out_ld = pl.pallas_call(
        _bn_relu_kernel,
        grid=(n, n_row_tiles),
        in_specs=[
            pl.BlockSpec((1, th, w * cout), lambda i, r: (i, r, 0)),
            pl.BlockSpec((1, w * cout), lambda i, r: (0, 0)),
            pl.BlockSpec((1, w * cout), lambda i, r: (0, 0)),
        ],
        out_specs=pl.BlockSpec((1, th, w * cout), lambda i, r: (i, r, 0)),
        out_shape=jax.ShapeDtypeStruct((n, h, w * cout), jnp.float32),
        compiler_params=pltpu.CompilerParams(
            dimension_semantics=("parallel", "parallel"),
            vmem_limit_bytes=_VMEM_LIMIT_BYTES,
        ),
    )(conv_ld, scale_w, shift_w)

    out_nhwc = out_ld.reshape(n, h, w, cout)
    return jnp.transpose(out_nhwc, (0, 3, 1, 2))   # back to NCHW


def _reference(x_nchw, w_oihw, conv_bias, gamma, beta):
    """Pure-JAX f32 reference (Conv2d + training-mode BatchNorm2d + ReLU)."""
    conv = jax.lax.conv_general_dilated(
        x_nchw.astype(jnp.float32), w_oihw.astype(jnp.float32),
        window_strides=(1, 1), padding="SAME",
        dimension_numbers=("NCHW", "OIHW", "NCHW"),
        precision=jax.lax.Precision.HIGHEST,
    ) + conv_bias[None, :, None, None]
    mean = jnp.mean(conv, axis=(0, 2, 3), keepdims=True)
    var = jnp.mean((conv - mean) ** 2, axis=(0, 2, 3), keepdims=True)
    y = (conv - mean) / jnp.sqrt(var + _BN_EPS)
    y = y * gamma[None, :, None, None] + beta[None, :, None, None]
    return jnp.maximum(y, 0.0)


if __name__ == "__main__":
    # Small shapes consistent with the module: N=2, Cin=4, Cout=8, 16x16 spatial.
    N, Cin, Cout, H, W = 2, 4, 8, 16, 16

    key = jax.random.PRNGKey(0)
    k_x, k_w, k_b, k_g, k_bt = jax.random.split(key, 5)

    x = jax.random.normal(k_x, (N, Cin, H, W), dtype=jnp.float32)
    w = jax.random.normal(k_w, (Cout, Cin, 3, 3), dtype=jnp.float32) * 0.1
    conv_bias = jax.random.normal(k_b, (Cout,), dtype=jnp.float32) * 0.1
    gamma = 1.0 + 0.1 * jax.random.normal(k_g, (Cout,), dtype=jnp.float32)
    beta = 0.1 * jax.random.normal(k_bt, (Cout,), dtype=jnp.float32)

    out = jax.block_until_ready(conv_bn_relu(x, w, conv_bias, gamma, beta))
    ref = _reference(x, w, conv_bias, gamma, beta)

    assert out.shape == (N, Cout, H, W)
    # Tolerance sized for bf16 MXU operands + bf16 conv intermediate (outputs are O(1)
    # after BatchNorm); genuine bugs produce O(0.1-1) errors.
    assert jnp.allclose(out, ref, atol=3e-2, rtol=3e-2), "mismatch vs JAX reference"

    print("KERNEL_OK")
</pallas_src>

<mosaic_0001>
module attributes {stable_mosaic.version = 11 : i64} {
  func.func @_conv_stats_kernel(%arg0: i32, %arg1: i32, %arg2: memref<1x18x18x4xbf16, #tpu.memory_space<vmem>>, %arg3: memref<36x8xbf16, #tpu.memory_space<vmem>>, %arg4: memref<1x8x16x8xbf16, #tpu.memory_space<vmem>>, %arg5: memref<1x2x8xf32, #tpu.memory_space<vmem>>, %arg6: memref<128x36xbf16, #tpu.memory_space<vmem>>) attributes {dimension_semantics = [#tpu.dimension_semantics<parallel>, #tpu.dimension_semantics<arbitrary>], iteration_bounds = array<i64: 2, 2>, scalar_prefetch = 0 : i64, scratch_operands = 1 : i64, tpu.core_type = #tpu.core_type<tc>, window_params = [{transform_indices = @transform_0, window_bounds = array<i64: 1, 18, 18, 4>}, {pipeline_mode = #tpu.pipeline_mode<synchronous>, transform_indices = @transform_1, window_bounds = array<i64: 36, 8>}, {transform_indices = @transform_2, window_bounds = array<i64: 1, 8, 16, 8>}, {transform_indices = @transform_3, window_bounds = array<i64: 1, 2, 8>}]} {
    %c0_i32 = arith.constant 0 : i32
    %0 = arith.cmpi eq, %arg1, %c0_i32 : i32
    %1 = arith.extui %0 : i1 to i32
    %c0_i32_0 = arith.constant 0 : i32
    %2 = arith.cmpi ne, %1, %c0_i32_0 : i32
    scf.if %2 {
      %cst_64 = arith.constant 0.000000e+00 : f32
      %82 = vector.broadcast %cst_64 : f32 to vector<1x2x8xf32>
      %c0_65 = arith.constant 0 : index
      %c0_66 = arith.constant 0 : index
      %c0_67 = arith.constant 0 : index
      %83 = vector.load %arg5[%c0_65, %c0_66, %c0_67] : memref<1x2x8xf32, #tpu.memory_space<vmem>>, vector<1x2x8xf32>
      tpu.vector_store %arg5[%c0_65, %c0_66, %c0_67], %82 {strides = array<i32>} : memref<1x2x8xf32, #tpu.memory_space<vmem>>, vector<1x2x8xf32>,
    } else {
    }
    %c8_i32 = arith.constant 8 : i32
    %3 = arith.muli %arg1, %c8_i32 : i32
    %4 = tpu.assume_multiple %3, 8 : i32
    %c0_i32_1 = arith.constant 0 : i32
    %5 = arith.addi %4, %c0_i32_1 : i32
    %c0 = arith.constant 0 : index
    %6 = arith.index_cast %5 : i32 to index
    %c0_2 = arith.constant 0 : index
    %c0_3 = arith.constant 0 : index
    %7 = vector.load %arg2[%c0, %6, %c0_2, %c0_3] : memref<1x18x18x4xbf16, #tpu.memory_space<vmem>>, vector<1x8x16x4xbf16>
    %8 = vector.shape_cast %7 : vector<1x8x16x4xbf16> to vector<8x16x4xbf16>
    %9 = vector.shape_cast %8 : vector<8x16x4xbf16> to vector<128x4xbf16>
    %c0_4 = arith.constant 0 : index
    %c0_5 = arith.constant 0 : index
    %10 = vector.load %arg6[%c0_4, %c0_5] : memref<128x36xbf16, #tpu.memory_space<vmem>>, vector<128x4xbf16>
    tpu.vector_store %arg6[%c0_4, %c0_5], %9 {strides = array<i32>} : memref<128x36xbf16, #tpu.memory_space<vmem>>, vector<128x4xbf16>,
    %c0_i32_6 = arith.constant 0 : i32
    %11 = arith.addi %4, %c0_i32_6 : i32
    %c0_7 = arith.constant 0 : index
    %12 = arith.index_cast %11 : i32 to index
    %c1 = arith.constant 1 : index
    %c0_8 = arith.constant 0 : index
    %13 = vector.load %arg2[%c0_7, %12, %c1, %c0_8] : memref<1x18x18x4xbf16, #tpu.memory_space<vmem>>, vector<1x8x16x4xbf16>
    %14 = vector.shape_cast %13 : vector<1x8x16x4xbf16> to vector<8x16x4xbf16>
    %15 = vector.shape_cast %14 : vector<8x16x4xbf16> to vector<128x4xbf16>
    %c0_9 = arith.constant 0 : index
    %c4 = arith.constant 4 : index
    %16 = vector.load %arg6[%c0_9, %c4] : memref<128x36xbf16, #tpu.memory_space<vmem>>, vector<128x4xbf16>
    tpu.vector_store %arg6[%c0_9, %c4], %15 {strides = array<i32>} : memref<128x36xbf16, #tpu.memory_space<vmem>>, vector<128x4xbf16>,
    %c0_i32_10 = arith.constant 0 : i32
    %17 = arith.addi %4, %c0_i32_10 : i32
    %c0_11 = arith.constant 0 : index
    %18 = arith.index_cast %17 : i32 to index
    %c2 = arith.constant 2 : index
    %c0_12 = arith.constant 0 : index
    %19 = vector.load %arg2[%c0_11, %18, %c2, %c0_12] : memref<1x18x18x4xbf16, #tpu.memory_space<vmem>>, vector<1x8x16x4xbf16>
    %20 = vector.shape_cast %19 : vector<1x8x16x4xbf16> to vector<8x16x4xbf16>
    %21 = vector.shape_cast %20 : vector<8x16x4xbf16> to vector<128x4xbf16>
    %c0_13 = arith.constant 0 : index
    %c8 = arith.constant 8 : index
    %22 = vector.load %arg6[%c0_13, %c8] : memref<128x36xbf16, #tpu.memory_space<vmem>>, vector<128x4xbf16>
    tpu.vector_store %arg6[%c0_13, %c8], %21 {strides = array<i32>} : memref<128x36xbf16, #tpu.memory_space<vmem>>, vector<128x4xbf16>,
    %c1_i32 = arith.constant 1 : i32
    %23 = arith.addi %4, %c1_i32 : i32
    %c0_14 = arith.constant 0 : index
    %24 = arith.index_cast %23 : i32 to index
    %c0_15 = arith.constant 0 : index
    %c0_16 = arith.constant 0 : index
    %25 = vector.load %arg2[%c0_14, %24, %c0_15, %c0_16] : memref<1x18x18x4xbf16, #tpu.memory_space<vmem>>, vector<1x8x16x4xbf16>
    %26 = vector.shape_cast %25 : vector<1x8x16x4xbf16> to vector<8x16x4xbf16>
    %27 = vector.shape_cast %26 : vector<8x16x4xbf16> to vector<128x4xbf16>
    %c0_17 = arith.constant 0 : index
    %c12 = arith.constant 12 : index
    %28 = vector.load %arg6[%c0_17, %c12] : memref<128x36xbf16, #tpu.memory_space<vmem>>, vector<128x4xbf16>
    tpu.vector_store %arg6[%c0_17, %c12], %27 {strides = array<i32>} : memref<128x36xbf16, #tpu.memory_space<vmem>>, vector<128x4xbf16>,
    %c1_i32_18 = arith.constant 1 : i32
    %29 = arith.addi %4, %c1_i32_18 : i32
    %c0_19 = arith.constant 0 : index
    %30 = arith.index_cast %29 : i32 to index
    %c1_20 = arith.constant 1 : index
    %c0_21 = arith.constant 0 : index
    %31 = vector.load %arg2[%c0_19, %30, %c1_20, %c0_21] : memref<1x18x18x4xbf16, #tpu.memory_space<vmem>>, vector<1x8x16x4xbf16>
    %32 = vector.shape_cast %31 : vector<1x8x16x4xbf16> to vector<8x16x4xbf16>
    %33 = vector.shape_cast %32 : vector<8x16x4xbf16> to vector<128x4xbf16>
    %c0_22 = arith.constant 0 : index
    %c16 = arith.constant 16 : index
    %34 = vector.load %arg6[%c0_22, %c16] : memref<128x36xbf16, #tpu.memory_space<vmem>>, vector<128x4xbf16>
    tpu.vector_store %arg6[%c0_22, %c16], %33 {strides = array<i32>} : memref<128x36xbf16, #tpu.memory_space<vmem>>, vector<128x4xbf16>,
    %c1_i32_23 = arith.constant 1 : i32
    %35 = arith.addi %4, %c1_i32_23 : i32
    %c0_24 = arith.constant 0 : index
    %36 = arith.index_cast %35 : i32 to index
    %c2_25 = arith.constant 2 : index
    %c0_26 = arith.constant 0 : index
    %37 = vector.load %arg2[%c0_24, %36, %c2_25, %c0_26] : memref<1x18x18x4xbf16, #tpu.memory_space<vmem>>, vector<1x8x16x4xbf16>
    %38 = vector.shape_cast %37 : vector<1x8x16x4xbf16> to vector<8x16x4xbf16>
    %39 = vector.shape_cast %38 : vector<8x16x4xbf16> to vector<128x4xbf16>
    %c0_27 = arith.constant 0 : index
    %c20 = arith.constant 20 : index
    %40 = vector.load %arg6[%c0_27, %c20] : memref<128x36xbf16, #tpu.memory_space<vmem>>, vector<128x4xbf16>
    tpu.vector_store %arg6[%c0_27, %c20], %39 {strides = array<i32>} : memref<128x36xbf16, #tpu.memory_space<vmem>>, vector<128x4xbf16>,
    %c2_i32 = arith.constant 2 : i32
    %41 = arith.addi %4, %c2_i32 : i32
    %c0_28 = arith.constant 0 : index
    %42 = arith.index_cast %41 : i32 to index
    %c0_29 = arith.constant 0 : index
    %c0_30 = arith.constant 0 : index
    %43 = vector.load %arg2[%c0_28, %42, %c0_29, %c0_30] : memref<1x18x18x4xbf16, #tpu.memory_space<vmem>>, vector<1x8x16x4xbf16>
    %44 = vector.shape_cast %43 : vector<1x8x16x4xbf16> to vector<8x16x4xbf16>
    %45 = vector.shape_cast %44 : vector<8x16x4xbf16> to vector<128x4xbf16>
    %c0_31 = arith.constant 0 : index
    %c24 = arith.constant 24 : index
    %46 = vector.load %arg6[%c0_31, %c24] : memref<128x36xbf16, #tpu.memory_space<vmem>>, vector<128x4xbf16>
    tpu.vector_store %arg6[%c0_31, %c24], %45 {strides = array<i32>} : memref<128x36xbf16, #tpu.memory_space<vmem>>, vector<128x4xbf16>,
    %c2_i32_32 = arith.constant 2 : i32
    %47 = arith.addi %4, %c2_i32_32 : i32
    %c0_33 = arith.constant 0 : index
    %48 = arith.index_cast %47 : i32 to index
    %c1_34 = arith.constant 1 : index
    %c0_35 = arith.constant 0 : index
    %49 = vector.load %arg2[%c0_33, %48, %c1_34, %c0_35] : memref<1x18x18x4xbf16, #tpu.memory_space<vmem>>, vector<1x8x16x4xbf16>
    %50 = vector.shape_cast %49 : vector<1x8x16x4xbf16> to vector<8x16x4xbf16>
    %51 = vector.shape_cast %50 : vector<8x16x4xbf16> to vector<128x4xbf16>
    %c0_36 = arith.constant 0 : index
    %c28 = arith.constant 28 : index
    %52 = vector.load %arg6[%c0_36, %c28] : memref<128x36xbf16, #tpu.memory_space<vmem>>, vector<128x4xbf16>
    tpu.vector_store %arg6[%c0_36, %c28], %51 {strides = array<i32>} : memref<128x36xbf16, #tpu.memory_space<vmem>>, vector<128x4xbf16>,
    %c2_i32_37 = arith.constant 2 : i32
    %53 = arith.addi %4, %c2_i32_37 : i32
    %c0_38 = arith.constant 0 : index
    %54 = arith.index_cast %53 : i32 to index
    %c2_39 = arith.constant 2 : index
    %c0_40 = arith.constant 0 : index
    %55 = vector.load %arg2[%c0_38, %54, %c2_39, %c0_40] : memref<1x18x18x4xbf16, #tpu.memory_space<vmem>>, vector<1x8x16x4xbf16>
    %56 = vector.shape_cast %55 : vector<1x8x16x4xbf16> to vector<8x16x4xbf16>
    %57 = vector.shape_cast %56 : vector<8x16x4xbf16> to vector<128x4xbf16>
    %c0_41 = arith.constant 0 : index
    %c32 = arith.constant 32 : index
    %58 = vector.load %arg6[%c0_41, %c32] : memref<128x36xbf16, #tpu.memory_space<vmem>>, vector<128x4xbf16>
    tpu.vector_store %arg6[%c0_41, %c32], %57 {strides = array<i32>} : memref<128x36xbf16, #tpu.memory_space<vmem>>, vector<128x4xbf16>,
    %c0_42 = arith.constant 0 : index
    %c0_43 = arith.constant 0 : index
    %59 = vector.load %arg6[%c0_42, %c0_43] : memref<128x36xbf16, #tpu.memory_space<vmem>>, vector<128x36xbf16>
    %c0_44 = arith.constant 0 : index
    %c0_45 = arith.constant 0 : index
    %60 = vector.load %arg3[%c0_44, %c0_45] : memref<36x8xbf16, #tpu.memory_space<vmem>>, vector<36x8xbf16>
    %cst = arith.constant dense<0.000000e+00> : vector<128x8xf32>
    %61 = tpu.matmul %59, %60, %cst {dimension_numbers = #tpu.dot_dimension_numbers<[1], [0], [0], [1], [0, 0, 1, 1], [], []>} : vector<128x36xbf16>, vector<36x8xbf16>, vector<128x8xf32> -> vector<128x8xf32>
    %c0_46 = arith.constant 0 : index
    %c0_47 = arith.constant 0 : index
    %c0_48 = arith.constant 0 : index
    %62 = vector.load %arg5[%c0_46, %c0_47, %c0_48] : memref<1x2x8xf32, #tpu.memory_space<vmem>>, vector<1x1x8xf32>
    %63 = vector.shape_cast %62 : vector<1x1x8xf32> to vector<1x8xf32>
    %cst_49 = arith.constant dense<0.000000e+00> : vector<8xf32>
    %64 = vector.multi_reduction <add>, %61, %cst_49 [0] : vector<128x8xf32> to vector<8xf32>
    %65 = vector.shape_cast %64 : vector<8xf32> to vector<1x8xf32>
    %66 = arith.addf %63, %65 : vector<1x8xf32>
    %c0_50 = arith.constant 0 : index
    %c0_51 = arith.constant 0 : index
    %c0_52 = arith.constant 0 : index
    %67 = vector.load %arg5[%c0_50, %c0_51, %c0_52] : memref<1x2x8xf32, #tpu.memory_space<vmem>>, vector<1x1x8xf32>
    %68 = vector.shape_cast %67 : vector<1x1x8xf32> to vector<1x8xf32>
    %69 = vector.shape_cast %66 : vector<1x8xf32> to vector<1x1x8xf32>
    tpu.vector_store %arg5[%c0_50, %c0_51, %c0_52], %69 {strides = array<i32>} : memref<1x2x8xf32, #tpu.memory_space<vmem>>, vector<1x1x8xf32>,
    %c0_53 = arith.constant 0 : index
    %c1_54 = arith.constant 1 : index
    %c0_55 = arith.constant 0 : index
    %70 = vector.load %arg5[%c0_53, %c1_54, %c0_55] : memref<1x2x8xf32, #tpu.memory_space<vmem>>, vector<1x1x8xf32>
    %71 = vector.shape_cast %70 : vector<1x1x8xf32> to vector<1x8xf32>
    %72 = arith.mulf %61, %61 : vector<128x8xf32>
    %cst_56 = arith.constant dense<0.000000e+00> : vector<8xf32>
    %73 = vector.multi_reduction <add>, %72, %cst_56 [0] : vector<128x8xf32> to vector<8xf32>
    %74 = vector.shape_cast %73 : vector<8xf32> to vector<1x8xf32>
    %75 = arith.addf %71, %74 : vector<1x8xf32>
    %c0_57 = arith.constant 0 : index
    %c1_58 = arith.constant 1 : index
    %c0_59 = arith.constant 0 : index
    %76 = vector.load %arg5[%c0_57, %c1_58, %c0_59] : memref<1x2x8xf32, #tpu.memory_space<vmem>>, vector<1x1x8xf32>
    %77 = vector.shape_cast %76 : vector<1x1x8xf32> to vector<1x8xf32>
    %78 = vector.shape_cast %75 : vector<1x8xf32> to vector<1x1x8xf32>
    tpu.vector_store %arg5[%c0_57, %c1_58, %c0_59], %78 {strides = array<i32>} : memref<1x2x8xf32, #tpu.memory_space<vmem>>, vector<1x1x8xf32>,
    %79 = vector.shape_cast %61 : vector<128x8xf32> to vector<1x8x16x8xf32>
    %80 = arith.truncf %79 : vector<1x8x16x8xf32> to vector<1x8x16x8xbf16>
    %c0_60 = arith.constant 0 : index
    %c0_61 = arith.constant 0 : index
    %c0_62 = arith.constant 0 : index
    %c0_63 = arith.constant 0 : index
    %81 = vector.load %arg4[%c0_60, %c0_61, %c0_62, %c0_63] : memref<1x8x16x8xbf16, #tpu.memory_space<vmem>>, vector<1x8x16x8xbf16>
    tpu.vector_store %arg4[%c0_60, %c0_61, %c0_62, %c0_63], %80 {strides = array<i32>} : memref<1x8x16x8xbf16, #tpu.memory_space<vmem>>, vector<1x8x16x8xbf16>,
    return
  }
  func.func @transform_0(%arg0: i32, %arg1: i32) -> (i32, i32, i32, i32) {
    %c0_i32 = arith.constant 0 : i32
    %c0_i32_0 = arith.constant 0 : i32
    %c0_i32_1 = arith.constant 0 : i32
    %c0_i32_2 = arith.constant 0 : i32
    return %arg0, %c0_i32, %c0_i32_0, %c0_i32_1 : i32, i32, i32, i32
  }
  func.func @transform_1(%arg0: i32, %arg1: i32) -> (i32, i32) {
    %c0_i32 = arith.constant 0 : i32
    %c0_i32_0 = arith.constant 0 : i32
    %c0_i32_1 = arith.constant 0 : i32
    return %c0_i32, %c0_i32_0 : i32, i32
  }
  func.func @transform_2(%arg0: i32, %arg1: i32) -> (i32, i32, i32, i32) {
    %c0_i32 = arith.constant 0 : i32
    %c0_i32_0 = arith.constant 0 : i32
    %c0_i32_1 = arith.constant 0 : i32
    return %arg0, %arg1, %c0_i32, %c0_i32_0 : i32, i32, i32, i32
  }
  func.func @transform_3(%arg0: i32, %arg1: i32) -> (i32, i32, i32) {
    %c0_i32 = arith.constant 0 : i32
    %c0_i32_0 = arith.constant 0 : i32
    %c0_i32_1 = arith.constant 0 : i32
    return %arg0, %c0_i32, %c0_i32_0 : i32, i32, i32
  }
}

module attributes {stable_mosaic.version = 11 : i64} {
  func.func @_bn_relu_kernel(%arg0: i32, %arg1: i32, %arg2: memref<1x8x128xbf16, #tpu.memory_space<vmem>>, %arg3: memref<1x128xf32, #tpu.memory_space<vmem>>, %arg4: memref<1x128xf32, #tpu.memory_space<vmem>>, %arg5: memref<1x8x128xf32, #tpu.memory_space<vmem>>) attributes {dimension_semantics = [#tpu.dimension_semantics<parallel>, #tpu.dimension_semantics<parallel>], iteration_bounds = array<i64: 2, 2>, scalar_prefetch = 0 : i64, scratch_operands = 0 : i64, tpu.core_type = #tpu.core_type<tc>, window_params = [{transform_indices = @transform_0, window_bounds = array<i64: 1, 8, 128>}, {pipeline_mode = #tpu.pipeline_mode<synchronous>, transform_indices = @transform_1, window_bounds = array<i64: 1, 128>}, {pipeline_mode = #tpu.pipeline_mode<synchronous>, transform_indices = @transform_2, window_bounds = array<i64: 1, 128>}, {transform_indices = @transform_3, window_bounds = array<i64: 1, 8, 128>}]} {
    %c0 = arith.constant 0 : index
    %c0_0 = arith.constant 0 : index
    %c0_1 = arith.constant 0 : index
    %0 = vector.load %arg2[%c0, %c0_0, %c0_1] : memref<1x8x128xbf16, #tpu.memory_space<vmem>>, vector<1x8x128xbf16>
    %1 = arith.extf %0 : vector<1x8x128xbf16> to vector<1x8x128xf32>
    %c0_2 = arith.constant 0 : index
    %c0_3 = arith.constant 0 : index
    %2 = vector.load %arg3[%c0_2, %c0_3] : memref<1x128xf32, #tpu.memory_space<vmem>>, vector<1x128xf32>
    %3 = vector.shape_cast %2 : vector<1x128xf32> to vector<1x1x128xf32>
    %4 = vector.broadcast %3 : vector<1x1x128xf32> to vector<1x8x128xf32>
    %5 = arith.mulf %1, %4 : vector<1x8x128xf32>
    %c0_4 = arith.constant 0 : index
    %c0_5 = arith.constant 0 : index
    %6 = vector.load %arg4[%c0_4, %c0_5] : memref<1x128xf32, #tpu.memory_space<vmem>>, vector<1x128xf32>
    %7 = vector.shape_cast %6 : vector<1x128xf32> to vector<1x1x128xf32>
    %8 = vector.broadcast %7 : vector<1x1x128xf32> to vector<1x8x128xf32>
    %9 = arith.addf %5, %8 : vector<1x8x128xf32>
    %cst = arith.constant 0.000000e+00 : f32
    %10 = vector.broadcast %cst : f32 to vector<1x8x128xf32>
    %11 = arith.maximumf %9, %10 : vector<1x8x128xf32>
    %c0_6 = arith.constant 0 : index
    %c0_7 = arith.constant 0 : index
    %c0_8 = arith.constant 0 : index
    %12 = vector.load %arg5[%c0_6, %c0_7, %c0_8] : memref<1x8x128xf32, #tpu.memory_space<vmem>>, vector<1x8x128xf32>
    tpu.vector_store %arg5[%c0_6, %c0_7, %c0_8], %11 {strides = array<i32>} : memref<1x8x128xf32, #tpu.memory_space<vmem>>, vector<1x8x128xf32>,
    return
  }
  func.func @transform_0(%arg0: i32, %arg1: i32) -> (i32, i32, i32) {
    %c0_i32 = arith.constant 0 : i32
    %c0_i32_0 = arith.constant 0 : i32
    return %arg0, %arg1, %c0_i32 : i32, i32, i32
  }
  func.func @transform_1(%arg0: i32, %arg1: i32) -> (i32, i32) {
    %c0_i32 = arith.constant 0 : i32
    %c0_i32_0 = arith.constant 0 : i32
    %c0_i32_1 = arith.constant 0 : i32
    return %c0_i32, %c0_i32_0 : i32, i32
  }
  func.func @transform_2(%arg0: i32, %arg1: i32) -> (i32, i32) {
    %c0_i32 = arith.constant 0 : i32
    %c0_i32_0 = arith.constant 0 : i32
    %c0_i32_1 = arith.constant 0 : i32
    return %c0_i32, %c0_i32_0 : i32, i32
  }
  func.func @transform_3(%arg0: i32, %arg1: i32) -> (i32, i32, i32) {
    %c0_i32 = arith.constant 0 : i32
    %c0_i32_0 = arith.constant 0 : i32
    return %arg0, %arg1, %c0_i32 : i32, i32, i32
  }
}

</mosaic_0001>

<bundles_post_ra>
// kernel: tile.18
= control target key start
LH: loop header
LB: loop body
LE: loop exit
PB: predicated region body
PF: predicated region fallthrough
CT: control target
= control target key end

     0   :  { %s28_s0 = inlined_call_operand.vmem [shape: f32[8], index: 0, kind: input, shape index: {}]   ;;  %s29_s1 = inlined_call_operand.vmem [shape: f32[16,8], index: 1, kind: output, shape index: {}]  }
   0x1   :  { %v4_v0 = vld [vmem:[%s28_s0] ss:$0 sm:$0xff] }
   0x2   :  { %5 = vst [vmem:[%s29_s1] sm:$0xff] %v4_v0  ;;  %8 = vst [vmem:[%s29_s1 + $0x8] sm:$0xff] %v4_v0 }

// kernel: tile.19
= control target key start
LH: loop header
LB: loop body
LE: loop exit
PB: predicated region body
PF: predicated region fallthrough
CT: control target
= control target key end

     0   :  { %s131_s10 = smov 120   ;;  %s132_s11 = smov 104   ;;  %vm3_vm0 = vcmask 64512   ;;  %vm9_vm1 = vcmask 1048512   ;;  %vm15_vm2 = vcmask 982912   ;;  %vm21_vm3 = vcmask 917312   ;;  %s207_s0 = inlined_call_operand.vmem [shape: f32[16,8], index: 0, kind: input, shape index: {}]   ;;  %s208_s1 = inlined_call_operand.vmem [shape: f32[1,128], index: 1, kind: output, shape index: {}]  }
   0x1   :  { %v101_v0 = vld [vmem:[%s207_s0 + $0xf] sm:$0x1]   ;;  %v103_v1 = vld [vmem:[%s207_s0 + $0xd] sm:$0x1]   ;;  %v102_v2 = vld [vmem:[%s207_s0 + $0xe] sm:$0x1]  }
   0x2   :  { %7 = vrot.lane.b32.xlu0 %v101_v0, %s131_s10  ;;  %19 = vrot.lane.b32.xlu1 %v103_v1, %s132_s11  ;;  %v104_v3 = vld [vmem:[%s207_s0 + $0xc] sm:$0x1]   ;;  %s133_s16 = smov 112   ;;  %s134_s17 = smov 96   ;;  %v105_v4 = vld [vmem:[%s207_s0 + $0xb] sm:$0x1]  }
   0x3   :  { %v106_v5 = vld [vmem:[%s207_s0 + $0xa] sm:$0x1]   ;;  %v2_v6 = vld [vmem:[%s207_s0] sm:$0x1]   ;;  %s135_s24 = smov 88   ;;  %s136_s25 = smov 80  }
   0x4   :  { %4 = vst.msk [vmem:[#allocation0] sm:$0x1] %vm3_vm0, %v2_v6   ;;  %v107_v7 = vld [vmem:[%s207_s0 + $0x9] sm:$0x1]   ;;  %v108_v8 = vld [vmem:[%s207_s0 + $0x8] sm:$0x1]  }
   0x5   :  { %s137_s30 = smov 72   ;;  %s138_s2 = smov 64   ;;  %v109_v9 = vld [vmem:[%s207_s0 + $0x7] sm:$0x1]   ;;  %v110_v10 = vld [vmem:[%s207_s0 + $0x6] sm:$0x1]  }
   0x6   :  { %13 = vrot.lane.b32.xlu0 %v102_v2, %s133_s16  ;;  %25 = vrot.lane.b32.xlu1 %v104_v3, %s134_s17  ;;  %s139_s7 = smov 56   ;;  %s140_s8 = smov 48   ;;  %v111_v11 = vld [vmem:[%s207_s0 + $0x5] sm:$0x1]   ;;  %v112_v12 = vld [vmem:[%s207_s0 + $0x4] sm:$0x1]  }
   0x7   :  { %s141_s13 = smov 40   ;;  %s142_s14 = smov 32   ;;  %v113_v13 = vld [vmem:[%s207_s0 + $0x3] sm:$0x1]   ;;  %v114_v14 = vld [vmem:[%s207_s0 + $0x2] sm:$0x1]  }
   0x8   :  { %s143_s19 = smov 24   ;;  %s144_s20 = smov 16   ;;  %v115_v15 = vld [vmem:[%s207_s0 + $0x1] sm:$0x1]   ;;  %vm27_vm4 = vcmask 851712   ;;  %vm33_vm5 = vcmask 786112  }
   0x9   :  { %s145_s0 = smov 8   ;;  %vm39_vm6 = vcmask 720512   ;;  %vm45_vm7 = vcmask 654912   ;;  %vm51_vm8 = vcmask 589312   ;;  %vm57_vm9 = vcmask 523712  }
   0xa   :  { %31 = vrot.lane.b32.xlu0 %v105_v4, %s135_s24  ;;  %37 = vrot.lane.b32.xlu1 %v106_v5, %s136_s25  ;;  %vm63_vm10 = vcmask 458112   ;;  %vm69_vm11 = vcmask 392512   ;;  %vm75_vm12 = vcmask 326912   ;;  %vm81_vm13 = vcmask 261312  }
   0xb   :  { %vm87_vm14 = vcmask 195712   ;;  %vm93_vm15 = vcmask 130112  }
   0xe   :  { %43 = vrot.lane.b32.xlu0 %v107_v7, %s137_s30  ;;  %49 = vrot.lane.b32.xlu1 %v108_v8, %s138_s2 }
  0x12   :  { %55 = vrot.lane.b32.xlu0 %v109_v9, %s139_s7  ;;  %61 = vrot.lane.b32.xlu1 %v110_v10, %s140_s8 }
  0x16   :  { %67 = vrot.lane.b32.xlu0 %v111_v11, %s141_s13  ;;  %73 = vrot.lane.b32.xlu1 %v112_v12, %s142_s14 }
  0x1a   :  { %79 = vrot.lane.b32.xlu0 %v113_v13, %s143_s19  ;;  %85 = vrot.lane.b32.xlu1 %v114_v14, %s144_s20 }
  0x1e   :  { %91 = vrot.lane.b32.xlu0 %v115_v15, %s145_s0 }
  0x74   :  { %v8_v16 = vpop.permute.xlu0 %7   ;;  %v20_v17 = vpop.permute.xlu1 %19  }
  0x75   :  { %10 = vst.msk [vmem:[#allocation0] sm:$0x1] %vm9_vm1, %v8_v16  }
  0x78   :  { %v14_v18 = vpop.permute.xlu0 %13   ;;  %v26_v19 = vpop.permute.xlu1 %25  }
  0x79   :  { %16 = vst.msk [vmem:[#allocation0] sm:$0x1] %vm15_vm2, %v14_v18  }
  0x7a   :  { %22 = vst.msk [vmem:[#allocation0] sm:$0x1] %vm21_vm3, %v20_v17  }
  0x7b   :  { %28 = vst.msk [vmem:[#allocation0] sm:$0x1] %vm27_vm4, %v26_v19  }
  0x7c   :  { %v32_v20 = vpop.permute.xlu0 %31   ;;  %v38_v21 = vpop.permute.xlu1 %37  }
  0x7d   :  { %34 = vst.msk [vmem:[#allocation0] sm:$0x1] %vm33_vm5, %v32_v20  }
  0x7e   :  { %40 = vst.msk [vmem:[#allocation0] sm:$0x1] %vm39_vm6, %v38_v21  }
  0x80   :  { %v44_v22 = vpop.permute.xlu0 %43   ;;  %v50_v23 = vpop.permute.xlu1 %49  }
  0x81   :  { %46 = vst.msk [vmem:[#allocation0] sm:$0x1] %vm45_vm7, %v44_v22  }
  0x82   :  { %52 = vst.msk [vmem:[#allocation0] sm:$0x1] %vm51_vm8, %v50_v23  }
  0x84   :  { %v56_v24 = vpop.permute.xlu0 %55   ;;  %v62_v25 = vpop.permute.xlu1 %61  }
  0x85   :  { %58 = vst.msk [vmem:[#allocation0] sm:$0x1] %vm57_vm9, %v56_v24  }
  0x86   :  { %64 = vst.msk [vmem:[#allocation0] sm:$0x1] %vm63_vm10, %v62_v25  }
  0x88   :  { %v68_v26 = vpop.permute.xlu0 %67   ;;  %v74_v27 = vpop.permute.xlu1 %73  }
  0x89   :  { %70 = vst.msk [vmem:[#allocation0] sm:$0x1] %vm69_vm11, %v68_v26  }
  0x8a   :  { %76 = vst.msk [vmem:[#allocation0] sm:$0x1] %vm75_vm12, %v74_v27  }
  0x8c   :  { %v80_v28 = vpop.permute.xlu0 %79   ;;  %v86_v29 = vpop.permute.xlu1 %85  }
  0x8d   :  { %82 = vst.msk [vmem:[#allocation0] sm:$0x1] %vm81_vm13, %v80_v28  }
  0x8e   :  { %88 = vst.msk [vmem:[#allocation0] sm:$0x1] %vm87_vm14, %v86_v29  }
  0x90   :  { %v92_v30 = vpop.permute.xlu0 %91  }
  0x91   :  { %94 = vst.msk [vmem:[#allocation0] sm:$0x1] %vm93_vm15, %v92_v30  }
  0x98   :  { %v98_v31 = vld [vmem:[#allocation0] sm:$0x1] }
  0x99   :  { %100 = vst [vmem:[%s208_s1] sm:$0x1] %v98_v31 }

// kernel: conv_bn_relu.3
= control target key start
LH: loop header
LB: loop body
LE: loop exit
PB: predicated region body
PF: predicated region fallthrough
CT: control target
= control target key end

     0   :  { %s421_s12 = smov 0   ;;  %s423_s13 = smov 0   ;;  %s472_s0 = inlined_call_operand.vmem [shape: bf16[2,16,128], index: 0, kind: input, shape index: {}]   ;;  %s473_s1 = inlined_call_operand.vmem [shape: f32[1,128], index: 1, kind: input, shape index: {}]   ;;  %s474_s2 = inlined_call_operand.vmem [shape: f32[1,128], index: 2, kind: input, shape index: {}]   ;;  %s475_s3 = inlined_call_operand.vmem [shape: f32[2,16,128], index: 3, kind: output, shape index: {}]  }
   0x1   :  { %s425_s14 = smov 0   ;;  %s427_s15 = smov 0  }
   0x2   :  { %s429_s16 = smov 0  }
   0x3 LB: > { %s22_s17 = sadd.s32 1, %s391_s14  ;;  %s25_s18 = sadd.s32 1, %s395_s15  ;;  %s399_s16 = sphi %s429_s16, %s13_s16   ;;  %s395_s15 = sphi %s427_s15, %s479_s15   ;;  %s391_s14 = sphi %s425_s14, %s478_s14   ;;  %s387_s13 = sphi %s423_s13, %s477_s13   ;;  %s383_s12 = sphi %s421_s12, %s476_s12  }
   0x4   : > { %p23_p0 = scmp.ge.s32.totalorder %s22_s17, 2  ;;  %p312_p1 = scmp.ge.s32.totalorder %s399_s16, 1 }
   0x5   : > { %p156_p2 = scmp.lt.s32.totalorder %s399_s16, 5 }
   0x6   : > { %s481_s17 = smov (%p23_p0, %s22_s17), 0  ;;  %s483_s18 = smov (!%p23_p0, %s25_s18), %s395_s15 }
   0x7   : > { %p157_p3 = pnand %p312_p1, %p156_p2  ;;  %p27_p4 = scmp.ge.s32.totalorder %s483_s18, 2 }
   0x8   : > { %p186_p5 = scmp.lt.s32.totalorder (!%p157_p3), %s387_s13, 1  ;;  %p188_p6 = scmp.lt.s32.totalorder (!%p157_p3), %s383_s12, 1  ;;  %v317_v1 = vld [vmem:[%s473_s1] ss:$0 sm:$0xff] (!%p157_p3) }
   0x9   : > { %s485_s18 = smov (%p27_p4, %s483_s18), 0  ;;  %160 = sbr.rel (%p157_p3) target bundleno = 31 (0x1f), region = 32 }
   0xa   : > { %v318_v3 = vld [vmem:[%s474_s2] ss:$0 sm:$0xff] (!%p157_p3) }
  0x10   : > { %s487_s13 = smov (!%p186_p5, %s387_s13), 1  ;;  %s489_s12 = smov (!%p188_p6, %s383_s12), 1 }
  0x11   : > { %s313_s19 = sshll.u32 %s487_s13, 1 }
  0x12   : > { %s191_s20 = sadd.s32 %s313_s19, %s489_s12 }
  0x13   : > { %s314_s21 = sshll.u32 %s191_s20, 2  ;;  %s316_s29 = sshll.u32 %s191_s20, 3 }
  0x14   : > { %s193_s24 = scalar_lea.vmem %s472_s0, %s314_s21  ;;  %s201_s5 = scalar_lea.vmem %s475_s3, %s316_s29 }
  0x15   : > { %v202_v0 = vld [vmem:[%s193_s24] sm:$0xf] }
  0x16   : > { %v203_v2 = vunpack.c.l.bf16 %v202_v0 }
  0x18   : > { %v211_v4 = vmul.f32 %v317_v1, %v203_v2 }
  0x1a   : > { %v219_v5 = vadd.f32 %v318_v3, %v211_v4 }
  0x1c   : > { %v220_v6 = vmax.f32 %v219_v5, 0.0 }
  0x1e   : > { %221 = vst [vmem:[%s201_s5] sm:$0xff] %v220_v6 }
  0x1f PF: > { %s13_s16 = sadd.s32 1, %s399_s16   ;;  %s476_s12 = smov %s391_s14 }
  0x20   : > { %p10_p7 = scmp.ge.s32.totalorder %s13_s16, 6   ;;  %s477_s13 = smov %s395_s15 }
  0x21   : > { %s478_s14 = smov %s481_s17  ;;  %s479_s15 = smov %s485_s18 }
  0x22   :  { %12 = sbr.rel (!%p10_p7) target bundleno = 3 (0x3), region = 62 }

// kernel: conv_bn_relu.2
= control target key start
LH: loop header
LB: loop body
LE: loop exit
PB: predicated region body
PF: predicated region fallthrough
CT: control target
= control target key end

     0   :  { %s2725_s12 = smov 0   ;;  %s2727_s13 = smov 0   ;;  %s3385_s0 = inlined_call_operand.vmem [shape: bf16[2,18,18,4], index: 0, kind: input, shape index: {}]   ;;  %s3386_s1 = inlined_call_operand.vmem [shape: bf16[36,8], index: 1, kind: input, shape index: {}]   ;;  %s3387_s2 = inlined_call_operand.vmem [shape: bf16[2,16,16,8], index: 2, kind: output, shape index: {0}]   ;;  %s3388_s3 = inlined_call_operand.vmem [shape: f32[2,2,8], index: 3, kind: output, shape index: {1}]  }
   0x1   :  { %s2729_s14 = smov 0   ;;  %s2731_s15 = smov 0  }
   0x2   :  { %s2733_s16 = smov 0  }
   0x3 LB: > { %s23_s17 = sadd.s32 1, %s2686_s14  ;;  %s26_s18 = sadd.s32 1, %s2690_s15  ;;  %s2694_s16 = sphi %s2733_s16, %s14_s16   ;;  %s2690_s15 = sphi %s2731_s15, %s3396_s15   ;;  %s2686_s14 = sphi %s2729_s14, %s3395_s14   ;;  %s2682_s13 = sphi %s2727_s13, %s3394_s13   ;;  %s2678_s12 = sphi %s2725_s12, %s3393_s12  }
   0x4   : > { %p24_p0 = scmp.ge.s32.totalorder %s23_s17, 2  ;;  %p2253_p1 = scmp.ge.s32.totalorder %s2694_s16, 1 }
   0x5   : > { %p154_p2 = scmp.lt.s32.totalorder %s2694_s16, 5 }
   0x6   : > { %s3398_s17 = smov (%p24_p0, %s23_s17), 0  ;;  %s3400_s18 = smov (!%p24_p0, %s26_s18), %s2690_s15 }
   0x7   : > { %p155_p3 = pnand %p2253_p1, %p154_p2  ;;  %p28_p4 = scmp.ge.s32.totalorder %s3400_s18, 2 }
   0x8   : > { %p187_p5 = scmp.lt.s32.totalorder (!%p155_p3), %s2682_s13, 1  ;;  %s2255_s19 = sshll.u32 (!%p155_p3), %s2678_s12, 3 }
   0x9   : > { %s3402_s18 = smov (%p28_p4, %s3400_s18), 0  ;;  %158 = sbr.rel (%p155_p3) target bundleno = 546 (0x222), region = 28 }
   0xa   : > { %p195_p6 = scmp.lt.s32.totalorder (!%p155_p3), %s2255_s19, 15  ;;  %p2260_p7 = scmp.ne.s32.totalorder (!%p155_p3), %s2678_s12, 0 }
  0x10   : > { %s3404_s13 = smov (!%p187_p5, %s2682_s13), 1  ;;  %s3406_s19 = smov (!%p195_p6, %s2255_s19), 15 }
  0x11   : > { %s2579_s20 = smul.u32 216, %s3404_s13  ;;  %s2257_s21 = sshll.u32 %s3404_s13, 5  ;;  %vm212_vm0 = vcmask (!%p2260_p7), 58368   ;;  %v2696_v0 = vmov (!%p2260_p7), 0.0  }
  0x12   : > { %s2256_s22 = sshll.u32 %s3406_s19, 1  ;;  %s2259_s23 = sshll.u32 %s3404_s13, 1 }
  0x13   : > { %s191_s26 = scalar_lea.vmem %s3385_s0, %s2579_s20  ;;  %s199_s27 = sadd.s32 %s2257_s21, %s2256_s22 }
  0x14   : > { %s2258_s28 = sshll.u32 %s199_s27, 2  ;;  %s2764_s4 = scalar_lea.vmem %s3388_s3, %s2259_s23 }
  0x15   : > { %s2769_s7 = scalar_lea.vmem %s3387_s2, %s2258_s28  ;;  %211 = sbr.rel (%p2260_p7) target bundleno = 28 (0x1c), region = 32  ;;  %213 = vst.msk [vmem:[%s2764_s4] sm:$0x3] (!%p2260_p7), %vm212_vm0, %v2696_v0 }
  0x1c PF: > { %s2521_s8 = smul.u32 96, %s2678_s12  ;;  %vm315_vm1 = vsmask.f32 3328  ;;  %vm316_vm2 = vsmask.f32 7440  ;;  %vm615_vm3 = vcmask 1042432  }
  0x1d   : > { %vm616_vm4 = vcmask 1046532   ;;  %s2697_s10 = smov 12   ;;  %vm2798_vm6 = vmor %vm315_vm1, %vm316_vm2  ;;  %s2698_s11 = smov 8   ;;  %vm282_vm7 = vcmask 31744   ;;  %vm558_vm8 = vcmask 64544   ;;  %vm722_vm9 = vcmask 97344  }
  0x1e   : > { %s2774_s9 = scalar_lea.vmem %s191_s26, %s2521_s8  ;;  %vm2788_vm5 = vmor %vm615_vm3, %vm616_vm4  ;;  %s2699_s12 = smov 4   ;;  %vm815_vm10 = vcmask 130144   ;;  %vm1088_vm11 = vcmask 162944   ;;  %vm1249_vm12 = vcmask 195744   ;;  %vm1342_vm13 = vcmask 228544  }
  0x1f   : > { %v2629_v1 = vld [vmem:[%s2774_s9 + $0xc] sm:$0xff]   ;;  %v2630_v2 = vld [vmem:[%s2774_s9 + $0x18] sm:$0xff]   ;;  %v291_v3 = vld [vmem:[%s2774_s9] sm:$0xf]  ;;  %s2700_s13 = smov 16   ;;  %s2701_s19 = smov 20  }
  0x20   : > { %791 = vrot.lane.b32.xlu0 %v2629_v1, %s2697_s10  ;;  %v292_v4 = vld [vmem:[%s2774_s9 + $0x4] sm:$0xf]  ;;  %v293_v5 = vld [vmem:[%s2774_s9 + $0x8] sm:$0x1]  ;;  %793 = vrot.lane.b32.xlu1 %v2630_v2, %s2697_s10  ;;  %v319_v6 = vshrl.u32 %v291_v3, 16  ;;  %v322_v7 = vshll.u32 %v291_v3, 16 }
  0x21   : > { %v328_v8 = vshll.u32 %v292_v4, 16  ;;  %v332_v9 = vshrl.u32 %v292_v4, 16  ;;  %v567_v10 = vld [vmem:[%s2774_s9] sm:$0xe]  ;;  %v338_v11 = vshll.u32 %v293_v5, 16  ;;  %s2702_s20 = smov 24  }
  0x22   : > { %v568_v12 = vld [vmem:[%s2774_s9 + $0x4] sm:$0xf]  ;;  %v569_v13 = vld [vmem:[%s2774_s9 + $0x8] sm:$0x1]  ;;  %v2280_v14 = vrot.slane %v567_v10, 9  ;;  %v321_v15 = vrot.slane %v319_v6, 4 }
  0x23   : > { %v324_v16 = vrot.slane %v322_v7, 5  ;;  %v330_v17 = vrot.slane %v328_v8, 5  ;;  %v334_v18 = vrot.slane %v332_v9, 4  ;;  %v294_v20 = vld [vmem:[%s2774_s9 + $0xc] sm:$0xf]  ;;  %v340_v21 = vrot.slane %v338_v11, 5 }
  0x24   : > { %v620_v22 = vrot.slane %v568_v12, 5  ;;  %v623_v23 = vrot.slane %v569_v13, 5  ;;  %v295_v24 = vld [vmem:[%s2774_s9 + $0x10] sm:$0xf]  ;;  %v343_v25 = vshrl.u32 %v294_v20, 16  ;;  %v346_v29 = vshll.u32 %v294_v20, 16 }
  0x25   : > { %v325_v26 = vor.u32 %v324_v16, %v321_v15  ;;  %v335_v27 = vor.u32 %v334_v18, %v330_v17  ;;  %v296_v28 = vld [vmem:[%s2774_s9 + $0x14] sm:$0x1]  ;;  %v352_v30 = vshll.u32 %v295_v24, 16  ;;  %v570_v31 = vld [vmem:[%s2774_s9 + $0xc] sm:$0xe]  ;;  %v356_v36 = vshrl.u32 %v295_v24, 16 }
  0x26   : > { %v621_v33 = vsel %vm2788_vm5, %v2280_v14, %v620_v22  ;;  %v622_v34 = vrot.slane %v620_v22, 4  ;;  %v345_v35 = vrot.slane %v343_v25, 4  ;;  %v571_v37 = vld [vmem:[%s2774_s9 + $0x10] sm:$0xf]  ;;  %v348_v40 = vrot.slane %v346_v29, 5  ;;  %s2703_s21 = smov 28  }
  0x27   : > { %v326_v38 = vrot.slane %v325_v26, 4  ;;  %v336_v39 = vrot.slane %v335_v27, 4  ;;  %v354_v41 = vrot.slane %v352_v30, 5  ;;  %v572_v42 = vld [vmem:[%s2774_s9 + $0x14] sm:$0x1]  ;;  %v358_v44 = vrot.slane %v356_v36, 4 }
  0x28   : > { %v624_v43 = vsel %vm2788_vm5, %v622_v34, %v623_v23  ;;  %v362_v45 = vshll.u32 %v296_v28, 16  ;;  %v2281_v46 = vrot.slane %v570_v31, 9  ;;  %v2322_v47 = vld [vmem:[%s2774_s9 + $0xc] sm:$0xf]  ;;  %v349_v51 = vor.u32 %v348_v40, %v345_v35  ;;  %v2323_v52 = vld [vmem:[%s2774_s9 + $0x10] sm:$0xf] }
  0x29   : > { %v331_v48 = vsel %vm2798_vm6, %v326_v38, %v330_v17  ;;  %v341_v49 = vsel %vm2798_vm6, %v336_v39, %v340_v21  ;;  %v2288_v50 = vcombine.low %v621_v33, %v624_v43  ;;  %v359_v54 = vor.u32 %v358_v44, %v354_v41  ;;  %v2324_v59 = vld [vmem:[%s2774_s9 + $0x14] sm:$0x1]  ;;  %v2325_v2 = vld [vmem:[%s2774_s9 + $0x18] sm:$0xf]  ;;  %v2326_v7 = vld [vmem:[%s2774_s9 + $0x1c] sm:$0xf] }
  0x2a   : > { %v2272_v53 = vcombine.low %v331_v48, %v341_v49  ;;  %v364_v55 = vrot.slane %v362_v45, 5  ;;  %v627_v56 = vrot.slane %v571_v37, 5  ;;  %v350_v57 = vrot.slane %v349_v51, 4  ;;  %v2327_v12 = vld [vmem:[%s2774_s9 + $0x20] sm:$0x1]  ;;  %s2704_s22 = smov 32  }
  0x2b   : > { %698 = vrot.lane.b32.xlu1 %v2288_v50, %s2698_s11  ;;  %v630_v58 = vrot.slane %v572_v42, 5  ;;  %v849_v60 = vshrl.u32 %v2322_v47, 16  ;;  %v852_v61 = vshll.u32 %v2322_v47, 16  ;;  %v360_v62 = vrot.slane %v359_v54, 4  ;;  %v2354_v13 = vld [vmem:[%s2774_s9 + $0xc] sm:$0xe] }
  0x2c   : > { %534 = vrot.lane.b32.xlu0 %v2272_v53, %s2699_s12  ;;  %v628_v63 = vsel %vm2788_vm5, %v2281_v46, %v627_v56  ;;  %v629_v0 = vrot.slane %v627_v56, 4  ;;  %v858_v1 = vshll.u32 %v2323_v52, 16  ;;  %v355_v3 = vsel %vm2798_vm6, %v350_v57, %v354_v41  ;;  %v2355_v18 = vld [vmem:[%s2774_s9 + $0x10] sm:$0xf]  ;;  %v2356_v20 = vld [vmem:[%s2774_s9 + $0x14] sm:$0x1] }
  0x2d   : > { %v851_v4 = vrot.slane %v849_v60, 4  ;;  %v854_v5 = vrot.slane %v852_v61, 5  ;;  %v862_v6 = vshrl.u32 %v2323_v52, 16  ;;  %v365_v8 = vsel %vm2798_vm6, %v360_v62, %v364_v55  ;;  %v2357_v21 = vld [vmem:[%s2774_s9 + $0x18] sm:$0xe] }
  0x2e   : > { %v631_v9 = vsel %vm2788_vm5, %v629_v0, %v630_v58  ;;  %v860_v10 = vrot.slane %v858_v1, 5  ;;  %v868_v11 = vshll.u32 %v2324_v59, 16  ;;  %v2273_v14 = vcombine.low %v355_v3, %v365_v8  ;;  %v2358_v26 = vld [vmem:[%s2774_s9 + $0x1c] sm:$0xf]  ;;  %v2359_v27 = vld [vmem:[%s2774_s9 + $0x20] sm:$0x1] }
  0x2f   : > { %v2289_v15 = vcombine.low %v628_v63, %v631_v9  ;;  %v855_v16 = vor.u32 %v854_v5, %v851_v4  ;;  %v864_v17 = vrot.slane %v862_v6, 4  ;;  %v873_v23 = vshrl.u32 %v2325_v2, 16  ;;  %v2420_v45 = vld [vmem:[%s2774_s9 + $0x18] sm:$0xf]  ;;  %v2421_v50 = vld [vmem:[%s2774_s9 + $0x1c] sm:$0xf] }
  0x30   : > { %v870_v22 = vrot.slane %v868_v11, 5  ;;  %v876_v24 = vshll.u32 %v2325_v2, 16  ;;  %v882_v25 = vshll.u32 %v2326_v7, 16  ;;  %536 = vrot.lane.b32.xlu0 %v2273_v14, %s2699_s12  ;;  %v886_v30 = vshrl.u32 %v2326_v7, 16  ;;  %v2422_v61 = vld [vmem:[%s2774_s9 + $0x20] sm:$0x1] }
  0x31   : > { %700 = vrot.lane.b32.xlu1 %v2289_v15, %s2698_s11  ;;  %v856_v28 = vrot.slane %v855_v16, 4  ;;  %v865_v29 = vor.u32 %v864_v17, %v860_v10  ;;  %v892_v31 = vshll.u32 %v2327_v12, 16  ;;  %v875_v33 = vrot.slane %v873_v23, 4  ;;  %v2423_v0 = vld [vmem:[%s2774_s9 + $0x24] sm:$0xf]  ;;  %v2631_v17 = vld [vmem:[%s2774_s9 + $0x18] sm:$0xff]  }
  0x32   : > { %v878_v34 = vrot.slane %v876_v24, 5  ;;  %v884_v35 = vrot.slane %v882_v25, 5  ;;  %v2378_v36 = vrot.slane %v2354_v13, 9  ;;  %v888_v39 = vrot.slane %v886_v30, 4  ;;  %v2424_v5 = vld [vmem:[%s2774_s9 + $0x28] sm:$0xf] }
  0x33   : > { %v861_v37 = vsel %vm2798_vm6, %v856_v28, %v860_v10  ;;  %v866_v38 = vrot.slane %v865_v29, 4  ;;  %v894_v40 = vrot.slane %v892_v31, 5  ;;  %v1147_v42 = vrot.slane %v2355_v18, 5  ;;  %v2425_v6 = vld [vmem:[%s2774_s9 + $0x2c] sm:$0x1] }
  0x34   : > { %v879_v41 = vor.u32 %v878_v34, %v875_v33  ;;  %v1150_v43 = vrot.slane %v2356_v20, 5  ;;  %v2379_v44 = vrot.slane %v2357_v21, 9  ;;  %v889_v47 = vor.u32 %v888_v39, %v884_v35  ;;  %v2452_v11 = vld [vmem:[%s2774_s9 + $0x18] sm:$0xe]  ;;  %v2453_v16 = vld [vmem:[%s2774_s9 + $0x1c] sm:$0xf] }
  0x35   : > { %v871_v46 = vsel %vm2798_vm6, %v866_v38, %v870_v22  ;;  %v1154_v48 = vrot.slane %v2358_v26, 5  ;;  %v1157_v49 = vrot.slane %v2359_v27, 5  ;;  %v1148_v53 = vsel %vm2788_vm5, %v2378_v36, %v1147_v42  ;;  %v2454_v23 = vld [vmem:[%s2774_s9 + $0x20] sm:$0x1]  ;;  %v297_v28 = vld [vmem:[%s2774_s9 + $0x18] sm:$0xf] }
  0x36   : > { %v2346_v51 = vcombine.low %v861_v37, %v871_v46  ;;  %v880_v52 = vrot.slane %v879_v41, 4  ;;  %v1149_v54 = vrot.slane %v1147_v42, 4  ;;  %v890_v55 = vrot.slane %v889_v47, 4  ;;  %v298_v38 = vld [vmem:[%s2774_s9 + $0x1c] sm:$0xf]  ;;  %v2632_v39 = vld [vmem:[%s2774_s9 + $0x24] sm:$0xff]  }
  0x37   : > { %v1155_v56 = vsel %vm2788_vm5, %v2379_v44, %v1154_v48  ;;  %v1156_v57 = vrot.slane %v1154_v48, 4  ;;  %v1376_v58 = vshrl.u32 %v2420_v45, 16  ;;  %v1379_v62 = vshll.u32 %v2420_v45, 16 }
  0x38   : > { %1064 = vrot.lane.b32.xlu0 %v2346_v51, %s2700_s13  ;;  %v885_v59 = vsel %vm2798_vm6, %v880_v52, %v884_v35  ;;  %v1151_v60 = vsel %vm2788_vm5, %v1149_v54, %v1150_v43  ;;  %v1385_v63 = vshll.u32 %v2421_v50, 16  ;;  %v895_v1 = vsel %vm2798_vm6, %v890_v55, %v894_v40  ;;  %v299_v43 = vld [vmem:[%s2774_s9 + $0x20] sm:$0x1]  ;;  %v2457_v51 = vld [vmem:[%s2774_s9 + $0x2c] sm:$0x1] }
  0x39   : > { %v2386_v2 = vcombine.low %v1148_v53, %v1151_v60  ;;  %v1158_v3 = vsel %vm2788_vm5, %v1156_v57, %v1157_v49  ;;  %v1378_v4 = vrot.slane %v1376_v58, 4  ;;  %v2347_v7 = vcombine.low %v885_v59, %v895_v1  ;;  %v2455_v49 = vld [vmem:[%s2774_s9 + $0x24] sm:$0xe] }
  0x3a   : > { %v2387_v8 = vcombine.low %v1155_v56, %v1158_v3  ;;  %v1381_v9 = vrot.slane %v1379_v62, 5  ;;  %v1387_v10 = vrot.slane %v1385_v63, 5  ;;  %v1389_v12 = vshrl.u32 %v2421_v50, 16  ;;  %v2456_v50 = vld [vmem:[%s2774_s9 + $0x28] sm:$0xf] }
  0x3b   : > { %v1395_v13 = vshll.u32 %v2422_v61, 16  ;;  %v1400_v14 = vshrl.u32 %v2423_v0, 16  ;;  %v1403_v15 = vshll.u32 %v2423_v0, 16  ;;  %1066 = vrot.lane.b32.xlu1 %v2347_v7, %s2700_s13  ;;  %v1409_v20 = vshll.u32 %v2424_v5, 16  ;;  %v300_v56 = vld [vmem:[%s2774_s9 + $0x24] sm:$0xf] }
  0x3c   : > { %1225 = vrot.lane.b32.xlu0 %v2386_v2, %s2701_s19  ;;  %v1382_v18 = vor.u32 %v1381_v9, %v1378_v4  ;;  %v1413_v21 = vshrl.u32 %v2424_v5, 16  ;;  %v1419_v22 = vshll.u32 %v2425_v6, 16  ;;  %v1391_v24 = vrot.slane %v1389_v12, 4  ;;  %v301_v61 = vld [vmem:[%s2774_s9 + $0x28] sm:$0xf] }
  0x3d   : > { %v1397_v25 = vrot.slane %v1395_v13, 5  ;;  %v1402_v26 = vrot.slane %v1400_v14, 4  ;;  %v1405_v27 = vrot.slane %v1403_v15, 5  ;;  %v1411_v30 = vrot.slane %v1409_v20, 5  ;;  %v302_v12 = vld [vmem:[%s2774_s9 + $0x2c] sm:$0x1] }
  0x3e   : > { %v1383_v29 = vrot.slane %v1382_v18, 4  ;;  %v1415_v31 = vrot.slane %v1413_v21, 4  ;;  %v1421_v33 = vrot.slane %v1419_v22, 5  ;;  %v1392_v34 = vor.u32 %v1391_v24, %v1387_v10  ;;  %v573_v20 = vld [vmem:[%s2774_s9 + $0x18] sm:$0xe] }
  0x3f   : > { %v1406_v35 = vor.u32 %v1405_v27, %v1402_v26  ;;  %v2476_v36 = vrot.slane %v2452_v11, 9  ;;  %v1674_v37 = vrot.slane %v2453_v16, 5  ;;  %1227 = vrot.lane.b32.xlu1 %v2387_v8, %s2701_s19  ;;  %v1677_v42 = vrot.slane %v2454_v23, 5 }
  0x40   : > { %1318 = vrot.lane.b32.xlu0 %v2631_v17, %s2702_s20  ;;  %v1388_v40 = vsel %vm2798_vm6, %v1383_v29, %v1387_v10  ;;  %v1416_v41 = vor.u32 %v1415_v31, %v1411_v30  ;;  %v367_v44 = vshrl.u32 %v297_v28, 16  ;;  %v1393_v45 = vrot.slane %v1392_v34, 4  ;;  %v576_v31 = vld [vmem:[%s2774_s9 + $0x24] sm:$0xe] }
  0x41   : > { %v1407_v46 = vrot.slane %v1406_v35, 4  ;;  %v1675_v47 = vsel %vm2788_vm5, %v2476_v36, %v1674_v37  ;;  %v1676_v48 = vrot.slane %v1674_v37, 4  ;;  %v370_v54 = vshll.u32 %v297_v28, 16  ;;  %v577_v37 = vld [vmem:[%s2774_s9 + $0x28] sm:$0xf] }
  0x42   : > { %v1417_v52 = vrot.slane %v1416_v41, 4  ;;  %v369_v53 = vrot.slane %v367_v44, 4  ;;  %v376_v55 = vshll.u32 %v298_v38, 16  ;;  %v1398_v57 = vsel %vm2798_vm6, %v1393_v45, %v1397_v25  ;;  %v574_v25 = vld [vmem:[%s2774_s9 + $0x1c] sm:$0xf] }
  0x43   : > { %v1412_v58 = vsel %vm2798_vm6, %v1407_v46, %v1411_v30  ;;  %v1678_v59 = vsel %vm2788_vm5, %v1676_v48, %v1677_v42  ;;  %v380_v60 = vshrl.u32 %v298_v38, 16  ;;  %1320 = vrot.lane.b32.xlu1 %v2632_v39, %s2702_s20  ;;  %v2444_v62 = vcombine.low %v1388_v40, %v1398_v57  ;;  %v575_v30 = vld [vmem:[%s2774_s9 + $0x20] sm:$0x1]  ;;  %v578_v38 = vld [vmem:[%s2774_s9 + $0x2c] sm:$0x1] }
  0x44   : > { %v1422_v63 = vsel %vm2798_vm6, %v1417_v52, %v1421_v33  ;;  %v2484_v0 = vcombine.low %v1675_v47, %v1678_v59  ;;  %v372_v1 = vrot.slane %v370_v54, 5  ;;  %v378_v3 = vrot.slane %v376_v55, 5  ;;  %v2647_v39 = vld [vmem:[%s3386_s1] sm:$0xff]   ;;  %v2330_v55 = vld [vmem:[%s2774_s9 + $0x2c] sm:$0x1] }
  0x45   : > { %v2445_v2 = vcombine.low %v1412_v58, %v1422_v63  ;;  %v382_v4 = vrot.slane %v380_v60, 4  ;;  %v386_v5 = vshll.u32 %v299_v43, 16  ;;  %1591 = vrot.lane.b32.xlu0 %v2444_v62, %s2703_s21  ;;  %v2477_v7 = vrot.slane %v2455_v49, 9  ;;  %v2328_v44 = vld [vmem:[%s2774_s9 + $0x24] sm:$0xf]  ;;  %2549 = vmatprep.subr.bf16.mxu0 %v2647_v39 }
  0x46   : > { %v373_v6 = vor.u32 %v372_v1, %v369_v53  ;;  %v1681_v8 = vrot.slane %v2456_v50, 5  ;;  %v1684_v9 = vrot.slane %v2457_v51, 5  ;;  %v391_v13 = vshrl.u32 %v300_v56, 16  ;;  %v2329_v49 = vld [vmem:[%s2774_s9 + $0x28] sm:$0xf]  ;;  %2571 = vmatprep.subr.bf16.mxu1 %v2647_v39  ;;  %2550 = vmatpush3.bf16.msra.mxu0 %v2647_v39 }
  0x47   : > { %v383_v10 = vor.u32 %v382_v4, %v378_v3  ;;  %v388_v11 = vrot.slane %v386_v5, 5  ;;  %v394_v14 = vshll.u32 %v300_v56, 16  ;;  %1593 = vrot.lane.b32.xlu1 %v2445_v2, %s2703_s21  ;;  %v400_v18 = vshll.u32 %v301_v61, 16  ;;  %v2649_v50 = vld [vmem:[%s3386_s1 + $0x8] sm:$0xff]   ;;  %v2331_v56 = vld [vmem:[%s2774_s9 + $0x30] sm:$0xf]  ;;  %2574 = vmatpush3.bf16.msra.mxu1 %v2647_v39 }
  0x48   : > { %v374_v15 = vrot.slane %v373_v6, 4  ;;  %v1682_v16 = vsel %vm2788_vm5, %v2477_v7, %v1681_v8  ;;  %v1683_v17 = vrot.slane %v1681_v8, 4  ;;  %v393_v22 = vrot.slane %v391_v13, 4  ;;  %2551 = vmatprep.subr.bf16.mxu0 %v2649_v50  ;;  %2572 = vmatprep.subr.bf16.mxu1 %v2649_v50  ;;  %v2633_v8 = vld [vmem:[%s2774_s9 + $0x24] sm:$0xff]   ;;  %v2365_v39 = vld [vmem:[%s2774_s9 + $0x38] sm:$0x1] }
  0x49   : > { %v384_v21 = vrot.slane %v383_v10, 4  ;;  %v396_v23 = vrot.slane %v394_v14, 5  ;;  %v404_v24 = vshrl.u32 %v301_v61, 16  ;;  %1752 = vrot.lane.b32.xlu0 %v2484_v0, %s2704_s22  ;;  %v402_v28 = vrot.slane %v400_v18, 5  ;;  %v2332_v61 = vld [vmem:[%s2774_s9 + $0x34] sm:$0xf] }
  0x4a   : > { %v379_v26 = vsel %vm2798_vm6, %v374_v15, %v378_v3  ;;  %v1685_v27 = vsel %vm2788_vm5, %v1683_v17, %v1684_v9  ;;  %v410_v29 = vshll.u32 %v302_v12, 16  ;;  %v2282_v42 = vrot.slane %v573_v20, 9  ;;  %v2361_v17 = vld [vmem:[%s2774_s9 + $0x28] sm:$0xf]  ;;  %2552 = vmatpush3.bf16.msra.mxu0 %v2649_v50 }
  0x4b   : > { %v389_v33 = vsel %vm2798_vm6, %v384_v21, %v388_v11  ;;  %v2485_v34 = vcombine.low %v1682_v16, %v1685_v27  ;;  %v397_v35 = vor.u32 %v396_v23, %v393_v22  ;;  %v406_v36 = vrot.slane %v404_v24, 4  ;;  %v2333_v11 = vld [vmem:[%s2774_s9 + $0x38] sm:$0x1]  ;;  %v2360_v16 = vld [vmem:[%s2774_s9 + $0x24] sm:$0xe]  ;;  %2575 = vmatpush3.bf16.msra.mxu1 %v2649_v50 }
  0x4c   : > { %v2274_v40 = vcombine.low %v379_v26, %v389_v33  ;;  %v412_v41 = vrot.slane %v410_v29, 5  ;;  %v634_v43 = vrot.slane %v574_v25, 5  ;;  %v637_v47 = vrot.slane %v575_v30, 5  ;;  %v2362_v23 = vld [vmem:[%s2774_s9 + $0x2c] sm:$0x1] }
  0x4d   : > { %v398_v45 = vrot.slane %v397_v35, 4  ;;  %v407_v46 = vor.u32 %v406_v36, %v402_v28  ;;  %v2283_v48 = vrot.slane %v576_v31, 9  ;;  %1754 = vrot.lane.b32.xlu0 %v2485_v34, %s2704_s22  ;;  %v641_v53 = vrot.slane %v577_v37, 5  ;;  %v2364_v34 = vld [vmem:[%s2774_s9 + $0x34] sm:$0xf] }
  0x4e   : > { %538 = vrot.lane.b32.xlu1 %v2274_v40, %s2699_s12  ;;  %v635_v51 = vsel %vm2788_vm5, %v2282_v42, %v634_v43  ;;  %v636_v52 = vrot.slane %v634_v43, 4  ;;  %v644_v54 = vrot.slane %v578_v38, 5  ;;  %v897_v59 = vshrl.u32 %v2328_v44, 16  ;;  %v2634_v40 = vld [vmem:[%s2774_s9 + $0x30] sm:$0xff]  }
  0x4f   : > { %v403_v57 = vsel %vm2798_vm6, %v398_v45, %v402_v28  ;;  %v408_v58 = vrot.slane %v407_v46, 4  ;;  %v900_v60 = vshll.u32 %v2328_v44, 16  ;;  %v642_v63 = vsel %vm2788_vm5, %v2283_v48, %v641_v53  ;;  %v2363_v28 = vld [vmem:[%s2774_s9 + $0x30] sm:$0xe] }
  0x50   : > { %v638_v62 = vsel %vm2788_vm5, %v636_v52, %v637_v47  ;;  %v643_v0 = vrot.slane %v641_v53, 4  ;;  %v906_v1 = vshll.u32 %v2329_v49, 16  ;;  %v899_v4 = vrot.slane %v897_v59, 4  ;;  %v2428_v59 = vld [vmem:[%s2774_s9 + $0x38] sm:$0x1] }
  0x51   : > { %v413_v2 = vsel %vm2798_vm6, %v408_v58, %v412_v41  ;;  %v2290_v3 = vcombine.low %v635_v51, %v638_v62  ;;  %v902_v5 = vrot.slane %v900_v60, 5  ;;  %v910_v10 = vshrl.u32 %v2329_v49, 16  ;;  %v2426_v49 = vld [vmem:[%s2774_s9 + $0x30] sm:$0xf] }
  0x52   : > { %v2275_v6 = vcombine.low %v403_v57, %v413_v2  ;;  %v645_v7 = vsel %vm2788_vm5, %v643_v0, %v644_v54  ;;  %v908_v9 = vrot.slane %v906_v1, 5  ;;  %v916_v14 = vshll.u32 %v2330_v55, 16  ;;  %v2427_v54 = vld [vmem:[%s2774_s9 + $0x34] sm:$0xf]  ;;  %v2429_v0 = vld [vmem:[%s2774_s9 + $0x3c] sm:$0xf] }
  0x53   : > { %702 = vrot.lane.b32.xlu0 %v2290_v3, %s2698_s11  ;;  %v2291_v12 = vcombine.low %v642_v63, %v645_v7  ;;  %v903_v13 = vor.u32 %v902_v5, %v899_v4  ;;  %v921_v15 = vshrl.u32 %v2331_v56, 16  ;;  %v912_v18 = vrot.slane %v910_v10, 4  ;;  %v2430_v5 = vld [vmem:[%s2774_s9 + $0x40] sm:$0xf] }
  0x54   : > { %540 = vrot.lane.b32.xlu1 %v2275_v6, %s2699_s12  ;;  %v924_v20 = vshll.u32 %v2331_v56, 16  ;;  %v930_v21 = vshll.u32 %v2332_v61, 16  ;;  %v934_v22 = vshrl.u32 %v2332_v61, 16  ;;  %v918_v25 = vrot.slane %v916_v14, 5  ;;  %v2431_v6 = vld [vmem:[%s2774_s9 + $0x44] sm:$0x1] }
  0x55   : > { %v904_v24 = vrot.slane %v903_v13, 4  ;;  %v923_v26 = vrot.slane %v921_v15, 4  ;;  %v940_v27 = vshll.u32 %v2333_v11, 16  ;;  %v913_v29 = vor.u32 %v912_v18, %v908_v9  ;;  %v2458_v11 = vld [vmem:[%s2774_s9 + $0x30] sm:$0xe] }
  0x56   : > { %v926_v30 = vrot.slane %v924_v20, 5  ;;  %v932_v31 = vrot.slane %v930_v21, 5  ;;  %v936_v33 = vrot.slane %v934_v22, 4  ;;  %v2380_v37 = vrot.slane %v2360_v16, 9  ;;  %v2459_v16 = vld [vmem:[%s2774_s9 + $0x34] sm:$0xf] }
  0x57   : > { %795 = vrot.lane.b32.xlu0 %v2633_v8, %s2697_s10  ;;  %v909_v35 = vsel %vm2798_vm6, %v904_v24, %v908_v9  ;;  %v942_v36 = vrot.slane %v940_v27, 5  ;;  %v1161_v38 = vrot.slane %v2361_v17, 5  ;;  %v914_v41 = vrot.slane %v913_v29, 4  ;;  %v2460_v22 = vld [vmem:[%s2774_s9 + $0x38] sm:$0x1] }
  0x58   : > { %704 = vrot.lane.b32.xlu1 %v2291_v12, %s2698_s11  ;;  %v927_v42 = vor.u32 %v926_v30, %v923_v26  ;;  %v937_v43 = vor.u32 %v936_v33, %v932_v31  ;;  %v1164_v44 = vrot.slane %v2362_v23, 5  ;;  %v2381_v47 = vrot.slane %v2363_v28, 9  ;;  %v2635_v23 = vld [vmem:[%s2774_s9 + $0x30] sm:$0xff]  }
  0x59   : > { %v1162_v45 = vsel %vm2788_vm5, %v2380_v37, %v1161_v38  ;;  %v1163_v46 = vrot.slane %v1161_v38, 4  ;;  %v1168_v48 = vrot.slane %v2364_v34, 5  ;;  %v919_v50 = vsel %vm2798_vm6, %v914_v41, %v918_v25  ;;  %v303_v28 = vld [vmem:[%s2774_s9 + $0x30] sm:$0xf]  ;;  %v304_v38 = vld [vmem:[%s2774_s9 + $0x34] sm:$0xf] }
  0x5a   : > { %v928_v51 = vrot.slane %v927_v42, 4  ;;  %v938_v52 = vrot.slane %v937_v43, 4  ;;  %v1171_v53 = vrot.slane %v2365_v39, 5  ;;  %v2348_v55 = vcombine.low %v909_v35, %v919_v50  ;;  %v2636_v39 = vld [vmem:[%s2774_s9 + $0x3c] sm:$0xff]   ;;  %v305_v43 = vld [vmem:[%s2774_s9 + $0x38] sm:$0x1] }
  0x5b   : > { %v1165_v56 = vsel %vm2788_vm5, %v1163_v46, %v1164_v44  ;;  %v1169_v57 = vsel %vm2788_vm5, %v2381_v47, %v1168_v48  ;;  %v1170_v58 = vrot.slane %v1168_v48, 4  ;;  %v1424_v63 = vshrl.u32 %v2426_v49, 16 }
  0x5c   : > { %797 = vrot.lane.b32.xlu1 %v2634_v40, %s2697_s10  ;;  %v933_v60 = vsel %vm2798_vm6, %v928_v51, %v932_v31  ;;  %v943_v61 = vsel %vm2798_vm6, %v938_v52, %v942_v36  ;;  %v2388_v62 = vcombine.low %v1162_v45, %v1165_v56  ;;  %1068 = vrot.lane.b32.xlu0 %v2348_v55, %s2700_s13  ;;  %v1427_v3 = vshll.u32 %v2426_v49, 16  ;;  %v2461_v45 = vld [vmem:[%s2774_s9 + $0x3c] sm:$0xe] }
  0x5d   : > { %v2349_v1 = vcombine.low %v933_v60, %v943_v61  ;;  %v1172_v2 = vsel %vm2788_vm5, %v1170_v58, %v1171_v53  ;;  %v1433_v4 = vshll.u32 %v2427_v54, 16  ;;  %v1426_v8 = vrot.slane %v1424_v63, 4  ;;  %v2462_v58 = vld [vmem:[%s2774_s9 + $0x40] sm:$0xf] }
  0x5e   : > { %v2389_v7 = vcombine.low %v1169_v57, %v1172_v2  ;;  %v1437_v9 = vshrl.u32 %v2427_v54, 16  ;;  %v1443_v10 = vshll.u32 %v2428_v59, 16  ;;  %v1429_v12 = vrot.slane %v1427_v3, 5  ;;  %v2463_v59 = vld [vmem:[%s2774_s9 + $0x44] sm:$0x1] }
  0x5f   : > { %v1435_v13 = vrot.slane %v1433_v4, 5  ;;  %v1448_v14 = vshrl.u32 %v2429_v0, 16  ;;  %v1451_v15 = vshll.u32 %v2429_v0, 16  ;;  %v1457_v20 = vshll.u32 %v2430_v5, 16  ;;  %v306_v0 = vld [vmem:[%s2774_s9 + $0x3c] sm:$0xf] }
  0x60   : > { %1070 = vrot.lane.b32.xlu1 %v2349_v1, %s2700_s13  ;;  %v1439_v17 = vrot.slane %v1437_v9, 4  ;;  %v1445_v18 = vrot.slane %v1443_v10, 5  ;;  %v1461_v21 = vshrl.u32 %v2430_v5, 16  ;;  %1229 = vrot.lane.b32.xlu0 %v2388_v62, %s2701_s19  ;;  %v1430_v24 = vor.u32 %v1429_v12, %v1426_v8  ;;  %v307_v1 = vld [vmem:[%s2774_s9 + $0x40] sm:$0xf] }
  0x61   : > { %v1450_v25 = vrot.slane %v1448_v14, 4  ;;  %v1453_v26 = vrot.slane %v1451_v15, 5  ;;  %v1467_v27 = vshll.u32 %v2431_v6, 16  ;;  %v1459_v30 = vrot.slane %v1457_v20, 5  ;;  %v308_v6 = vld [vmem:[%s2774_s9 + $0x44] sm:$0x1] }
  0x62   : > { %v1440_v29 = vor.u32 %v1439_v17, %v1435_v13  ;;  %v1463_v31 = vrot.slane %v1461_v21, 4  ;;  %v2478_v33 = vrot.slane %v2458_v11, 9  ;;  %v1431_v34 = vrot.slane %v1430_v24, 4  ;;  %v579_v11 = vld [vmem:[%s2774_s9 + $0x30] sm:$0xe] }
  0x63   : > { %v1454_v35 = vor.u32 %v1453_v26, %v1450_v25  ;;  %v1469_v36 = vrot.slane %v1467_v27, 5  ;;  %v1688_v37 = vrot.slane %v2459_v16, 5  ;;  %v1691_v42 = vrot.slane %v2460_v22, 5  ;;  %v580_v16 = vld [vmem:[%s2774_s9 + $0x34] sm:$0xf] }
  0x64   : > { %1231 = vrot.lane.b32.xlu1 %v2389_v7, %s2701_s19  ;;  %v1441_v40 = vrot.slane %v1440_v29, 4  ;;  %v1464_v41 = vor.u32 %v1463_v31, %v1459_v30  ;;  %v415_v44 = vshrl.u32 %v303_v28, 16  ;;  %1322 = vrot.lane.b32.xlu0 %v2635_v23, %s2702_s20  ;;  %v1436_v46 = vsel %vm2798_vm6, %v1431_v34, %v1435_v13  ;;  %v581_v22 = vld [vmem:[%s2774_s9 + $0x38] sm:$0x1]  ;;  %v582_v23 = vld [vmem:[%s2774_s9 + $0x3c] sm:$0xe] }
  0x65   : > { %v1455_v47 = vrot.slane %v1454_v35, 4  ;;  %v1689_v48 = vsel %vm2788_vm5, %v2478_v33, %v1688_v37  ;;  %v1690_v49 = vrot.slane %v1688_v37, 4  ;;  %v418_v53 = vshll.u32 %v303_v28, 16  ;;  %v583_v28 = vld [vmem:[%s2774_s9 + $0x40] sm:$0xf] }
  0x66   : > { %v1446_v50 = vsel %vm2798_vm6, %v1441_v40, %v1445_v18  ;;  %v1465_v51 = vrot.slane %v1464_v41, 4  ;;  %v417_v52 = vrot.slane %v415_v44, 4  ;;  %v424_v57 = vshll.u32 %v304_v38, 16  ;;  %v584_v34 = vld [vmem:[%s2774_s9 + $0x44] sm:$0x1] }
  0x67   : > { %v2446_v54 = vcombine.low %v1436_v46, %v1446_v50  ;;  %v1460_v55 = vsel %vm2798_vm6, %v1455_v47, %v1459_v30  ;;  %v1692_v56 = vsel %vm2788_vm5, %v1690_v49, %v1691_v42  ;;  %v420_v62 = vrot.slane %v418_v53, 5  ;;  %v2334_v35 = vld [vmem:[%s2774_s9 + $0x3c] sm:$0xf] }
  0x68   : > { %1324 = vrot.lane.b32.xlu1 %v2636_v39, %s2702_s20  ;;  %v1470_v60 = vsel %vm2798_vm6, %v1465_v51, %v1469_v36  ;;  %v2486_v61 = vcombine.low %v1689_v48, %v1692_v56  ;;  %v428_v63 = vshrl.u32 %v304_v38, 16  ;;  %v426_v3 = vrot.slane %v424_v57, 5  ;;  %v2335_v48 = vld [vmem:[%s2774_s9 + $0x40] sm:$0xf] }
  0x69   : > { %1595 = vrot.lane.b32.xlu0 %v2446_v54, %s2703_s21  ;;  %v2447_v2 = vcombine.low %v1460_v55, %v1470_v60  ;;  %v434_v4 = vshll.u32 %v305_v43, 16  ;;  %v2479_v5 = vrot.slane %v2461_v45, 9  ;;  %v421_v7 = vor.u32 %v420_v62, %v417_v52  ;;  %v2336_v60 = vld [vmem:[%s2774_s9 + $0x44] sm:$0x1]  ;;  %v2337_v62 = vld [vmem:[%s2774_s9 + $0x48] sm:$0xf] }
  0x6a   : > { %v430_v8 = vrot.slane %v428_v63, 4  ;;  %v1695_v9 = vrot.slane %v2462_v58, 5  ;;  %v1698_v10 = vrot.slane %v2463_v59, 5  ;;  %v439_v13 = vshrl.u32 %v306_v0, 16 }
  0x6b   : > { %v436_v12 = vrot.slane %v434_v4, 5  ;;  %v442_v14 = vshll.u32 %v306_v0, 16  ;;  %v448_v15 = vshll.u32 %v307_v1, 16  ;;  %v422_v17 = vrot.slane %v421_v7, 4 }
  0x6c   : > { %1597 = vrot.lane.b32.xlu1 %v2447_v2, %s2703_s21  ;;  %v431_v18 = vor.u32 %v430_v8, %v426_v3  ;;  %v1696_v20 = vsel %vm2788_vm5, %v2479_v5, %v1695_v9  ;;  %v1697_v21 = vrot.slane %v1695_v9, 4  ;;  %v441_v24 = vrot.slane %v439_v13, 4  ;;  %v2339_v9 = vld [vmem:[%s2774_s9 + $0x50] sm:$0x1] }
  0x6d   : > { %1756 = vrot.lane.b32.xlu0 %v2486_v61, %s2704_s22  ;;  %v444_v25 = vrot.slane %v442_v14, 5  ;;  %v450_v26 = vrot.slane %v448_v15, 5  ;;  %v452_v27 = vshrl.u32 %v307_v1, 16  ;;  %v427_v29 = vsel %vm2798_vm6, %v422_v17, %v426_v3  ;;  %v2338_v3 = vld [vmem:[%s2774_s9 + $0x4c] sm:$0xf] }
  0x6e   : > { %v432_v30 = vrot.slane %v431_v18, 4  ;;  %v1699_v31 = vsel %vm2788_vm5, %v1697_v21, %v1698_v10  ;;  %v458_v33 = vshll.u32 %v308_v6, 16  ;;  %v2284_v39 = vrot.slane %v579_v11, 9  ;;  %v2637_v6 = vld [vmem:[%s2774_s9 + $0x3c] sm:$0xff]   ;;  %v2368_v21 = vld [vmem:[%s2774_s9 + $0x44] sm:$0x1] }
  0x6f   : > { %v2487_v36 = vcombine.low %v1696_v20, %v1699_v31  ;;  %v445_v37 = vor.u32 %v444_v25, %v441_v24  ;;  %v454_v38 = vrot.slane %v452_v27, 4  ;;  %v648_v42 = vrot.slane %v580_v16, 5  ;;  %v2366_v14 = vld [vmem:[%s2774_s9 + $0x3c] sm:$0xe]  ;;  %v2367_v15 = vld [vmem:[%s2774_s9 + $0x40] sm:$0xf] }
  0x70   : > { %v437_v40 = vsel %vm2798_vm6, %v432_v30, %v436_v12  ;;  %v460_v41 = vrot.slane %v458_v33, 5  ;;  %v651_v43 = vrot.slane %v581_v22, 5  ;;  %v2285_v47 = vrot.slane %v582_v23, 9  ;;  %v2370_v31 = vld [vmem:[%s2774_s9 + $0x4c] sm:$0xf] }
  0x71   : > { %v2276_v44 = vcombine.low %v427_v29, %v437_v40  ;;  %1758 = vrot.lane.b32.xlu0 %v2487_v36, %s2704_s22  ;;  %v446_v45 = vrot.slane %v445_v37, 4  ;;  %v455_v46 = vor.u32 %v454_v38, %v450_v26  ;;  %v649_v49 = vsel %vm2788_vm5, %v2284_v39, %v648_v42  ;;  %v2371_v37 = vld [vmem:[%s2774_s9 + $0x50] sm:$0x1]  ;;  %v2638_v38 = vld [vmem:[%s2774_s9 + $0x48] sm:$0xff]  }
  0x72   : > { %v650_v50 = vrot.slane %v648_v42, 4  ;;  %v655_v51 = vrot.slane %v583_v28, 5  ;;  %v658_v52 = vrot.slane %v584_v34, 5  ;;  %v945_v55 = vshrl.u32 %v2334_v35, 16 }
  0x73   : > { %542 = vrot.lane.b32.xlu1 %v2276_v44, %s2699_s12  ;;  %v451_v53 = vsel %vm2798_vm6, %v446_v45, %v450_v26  ;;  %v456_v54 = vrot.slane %v455_v46, 4  ;;  %v948_v56 = vshll.u32 %v2334_v35, 16  ;;  %v954_v61 = vshll.u32 %v2335_v48, 16  ;;  %v2369_v26 = vld [vmem:[%s2774_s9 + $0x48] sm:$0xe] }
  0x74   : > { %v652_v57 = vsel %vm2788_vm5, %v650_v50, %v651_v43  ;;  %v656_v58 = vsel %vm2788_vm5, %v2285_v47, %v655_v51  ;;  %v657_v59 = vrot.slane %v655_v51, 4  ;;  %v947_v1 = vrot.slane %v945_v55, 4  ;;  %v2432_v47 = vld [vmem:[%s2774_s9 + $0x48] sm:$0xf] }
  0x75   : > { %v461_v63 = vsel %vm2798_vm6, %v456_v54, %v460_v41  ;;  %v2292_v0 = vcombine.low %v649_v49, %v652_v57  ;;  %v950_v2 = vrot.slane %v948_v56, 5  ;;  %v956_v7 = vrot.slane %v954_v61, 5  ;;  %v2434_v57 = vld [vmem:[%s2774_s9 + $0x50] sm:$0x1] }
  0x76   : > { %v2277_v4 = vcombine.low %v451_v53, %v461_v63  ;;  %v659_v5 = vsel %vm2788_vm5, %v657_v59, %v658_v52  ;;  %v958_v8 = vshrl.u32 %v2335_v48, 16  ;;  %v964_v12 = vshll.u32 %v2336_v60, 16  ;;  %v2433_v52 = vld [vmem:[%s2774_s9 + $0x4c] sm:$0xf]  ;;  %v2436_v63 = vld [vmem:[%s2774_s9 + $0x58] sm:$0xf] }
  0x77   : > { %706 = vrot.lane.b32.xlu0 %v2292_v0, %s2698_s11  ;;  %v2293_v10 = vcombine.low %v656_v58, %v659_v5  ;;  %v951_v11 = vor.u32 %v950_v2, %v947_v1  ;;  %v969_v13 = vshrl.u32 %v2337_v62, 16  ;;  %v972_v17 = vshll.u32 %v2337_v62, 16  ;;  %v2435_v58 = vld [vmem:[%s2774_s9 + $0x54] sm:$0xf]  ;;  %v2437_v0 = vld [vmem:[%s2774_s9 + $0x5c] sm:$0x1] }
  0x78   : > { %544 = vrot.lane.b32.xlu1 %v2277_v4, %s2699_s12  ;;  %v960_v16 = vrot.slane %v958_v8, 4  ;;  %v978_v18 = vshll.u32 %v2338_v3, 16  ;;  %v982_v20 = vshrl.u32 %v2338_v3, 16  ;;  %v966_v23 = vrot.slane %v964_v12, 5  ;;  %v2464_v5 = vld [vmem:[%s2774_s9 + $0x48] sm:$0xe] }
  0x79   : > { %v952_v22 = vrot.slane %v951_v11, 4  ;;  %v971_v24 = vrot.slane %v969_v13, 4  ;;  %v988_v25 = vshll.u32 %v2339_v9, 16  ;;  %v974_v28 = vrot.slane %v972_v17, 5 }
  0x7a   : > { %v961_v27 = vor.u32 %v960_v16, %v956_v7  ;;  %v980_v29 = vrot.slane %v978_v18, 5  ;;  %v984_v30 = vrot.slane %v982_v20, 4  ;;  %v2382_v35 = vrot.slane %v2366_v14, 9 }
  0x7b   : > { %799 = vrot.lane.b32.xlu0 %v2637_v6, %s2697_s10  ;;  %v957_v33 = vsel %vm2798_vm6, %v952_v22, %v956_v7  ;;  %v990_v34 = vrot.slane %v988_v25, 5  ;;  %v1175_v36 = vrot.slane %v2367_v15, 5  ;;  %v975_v40 = vor.u32 %v974_v28, %v971_v24  ;;  %v2466_v15 = vld [vmem:[%s2774_s9 + $0x50] sm:$0x1] }
  0x7c   : > { %708 = vrot.lane.b32.xlu1 %v2293_v10, %s2698_s11  ;;  %v962_v39 = vrot.slane %v961_v27, 4  ;;  %v985_v41 = vor.u32 %v984_v30, %v980_v29  ;;  %v1178_v42 = vrot.slane %v2368_v21, 5  ;;  %v2383_v45 = vrot.slane %v2369_v26, 9  ;;  %v2465_v10 = vld [vmem:[%s2774_s9 + $0x4c] sm:$0xf] }
  0x7d   : > { %v1176_v43 = vsel %vm2788_vm5, %v2382_v35, %v1175_v36  ;;  %v1177_v44 = vrot.slane %v1175_v36, 4  ;;  %v1182_v46 = vrot.slane %v2370_v31, 5  ;;  %v976_v49 = vrot.slane %v975_v40, 4  ;;  %v2639_v21 = vld [vmem:[%s2774_s9 + $0x48] sm:$0xff]   ;;  %v2640_v36 = vld [vmem:[%s2774_s9 + $0x54] sm:$0xff]  }
  0x7e   : > { %v967_v48 = vsel %vm2798_vm6, %v962_v39, %v966_v23  ;;  %v986_v50 = vrot.slane %v985_v41, 4  ;;  %v1185_v51 = vrot.slane %v2371_v37, 5  ;;  %v1472_v62 = vshrl.u32 %v2432_v47, 16  ;;  %v309_v26 = vld [vmem:[%s2774_s9 + $0x48] sm:$0xf] }
  0x7f   : > { %v2350_v53 = vcombine.low %v957_v33, %v967_v48  ;;  %v1179_v54 = vsel %vm2788_vm5, %v1177_v44, %v1178_v42  ;;  %v1183_v55 = vsel %vm2788_vm5, %v2383_v45, %v1182_v46  ;;  %v1184_v56 = vrot.slane %v1182_v46, 4  ;;  %v310_v40 = vld [vmem:[%s2774_s9 + $0x4c] sm:$0xf]  ;;  %v311_v46 = vld [vmem:[%s2774_s9 + $0x50] sm:$0x1] }
  0x80   : > { %801 = vrot.lane.b32.xlu1 %v2638_v38, %s2697_s10  ;;  %v981_v59 = vsel %vm2798_vm6, %v976_v49, %v980_v29  ;;  %v991_v60 = vsel %vm2798_vm6, %v986_v50, %v990_v34  ;;  %v2390_v61 = vcombine.low %v1176_v43, %v1179_v54  ;;  %v1475_v3 = vshll.u32 %v2432_v47, 16 }
  0x81   : > { %1072 = vrot.lane.b32.xlu0 %v2350_v53, %s2700_s13  ;;  %v2351_v1 = vcombine.low %v981_v59, %v991_v60  ;;  %v1186_v2 = vsel %vm2788_vm5, %v1184_v56, %v1185_v51  ;;  %v1481_v4 = vshll.u32 %v2433_v52, 16  ;;  %v1474_v7 = vrot.slane %v1472_v62, 4  ;;  %v2467_v51 = vld [vmem:[%s2774_s9 + $0x54] sm:$0xe]  ;;  %v2468_v56 = vld [vmem:[%s2774_s9 + $0x58] sm:$0xf] }
  0x82   : > { %v2391_v6 = vcombine.low %v1183_v55, %v1186_v2  ;;  %v1485_v8 = vshrl.u32 %v2433_v52, 16  ;;  %v1491_v9 = vshll.u32 %v2434_v57, 16  ;;  %v1477_v11 = vrot.slane %v1475_v3, 5  ;;  %v2469_v57 = vld [vmem:[%s2774_s9 + $0x5c] sm:$0x1] }
  0x83   : > { %v1483_v12 = vrot.slane %v1481_v4, 5  ;;  %v1496_v13 = vshrl.u32 %v2435_v58, 16  ;;  %v1499_v14 = vshll.u32 %v2435_v58, 16  ;;  %v1505_v18 = vshll.u32 %v2436_v63, 16  ;;  %v312_v62 = vld [vmem:[%s2774_s9 + $0x54] sm:$0xf] }
  0x84   : > { %1074 = vrot.lane.b32.xlu1 %v2351_v1, %s2700_s13  ;;  %v1487_v16 = vrot.slane %v1485_v8, 4  ;;  %v1493_v17 = vrot.slane %v1491_v9, 5  ;;  %v1509_v20 = vshrl.u32 %v2436_v63, 16  ;;  %v1478_v22 = vor.u32 %v1477_v11, %v1474_v7  ;;  %v313_v63 = vld [vmem:[%s2774_s9 + $0x58] sm:$0xf] }
  0x85   : > { %1233 = vrot.lane.b32.xlu0 %v2390_v61, %s2701_s19  ;;  %v1498_v23 = vrot.slane %v1496_v13, 4  ;;  %v1501_v24 = vrot.slane %v1499_v14, 5  ;;  %v1515_v25 = vshll.u32 %v2437_v0, 16  ;;  %v1507_v28 = vrot.slane %v1505_v18, 5  ;;  %v314_v4 = vld [vmem:[%s2774_s9 + $0x5c] sm:$0x1] }
  0x86   : > { %v1488_v27 = vor.u32 %v1487_v16, %v1483_v12  ;;  %v1511_v29 = vrot.slane %v1509_v20, 4  ;;  %v2480_v30 = vrot.slane %v2464_v5, 9  ;;  %v1479_v31 = vrot.slane %v1478_v22, 4  ;;  %v585_v9 = vld [vmem:[%s2774_s9 + $0x48] sm:$0xe] }
  0x87   : > { %v1502_v33 = vor.u32 %v1501_v24, %v1498_v23  ;;  %v1517_v34 = vrot.slane %v1515_v25, 5  ;;  %v1702_v35 = vrot.slane %v2465_v10, 5  ;;  %v1705_v39 = vrot.slane %v2466_v15, 5  ;;  %v586_v14 = vld [vmem:[%s2774_s9 + $0x4c] sm:$0xf] }
  0x88   : > { %1235 = vrot.lane.b32.xlu1 %v2391_v6, %s2701_s19  ;;  %v1489_v37 = vrot.slane %v1488_v27, 4  ;;  %v1512_v38 = vor.u32 %v1511_v29, %v1507_v28  ;;  %v463_v41 = vshrl.u32 %v309_v26, 16  ;;  %v1484_v42 = vsel %vm2798_vm6, %v1479_v31, %v1483_v12  ;;  %v587_v15 = vld [vmem:[%s2774_s9 + $0x50] sm:$0x1]  ;;  %v588_v29 = vld [vmem:[%s2774_s9 + $0x54] sm:$0xe] }
  0x89   : > { %1326 = vrot.lane.b32.xlu0 %v2639_v21, %s2702_s20  ;;  %v1503_v43 = vrot.slane %v1502_v33, 4  ;;  %v1703_v44 = vsel %vm2788_vm5, %v2480_v30, %v1702_v35  ;;  %v1704_v45 = vrot.slane %v1702_v35, 4  ;;  %v466_v50 = vshll.u32 %v309_v26, 16  ;;  %v589_v35 = vld [vmem:[%s2774_s9 + $0x58] sm:$0xf] }
  0x8a   : > { %v1494_v47 = vsel %vm2798_vm6, %v1489_v37, %v1493_v17  ;;  %v1513_v48 = vrot.slane %v1512_v38, 4  ;;  %v465_v49 = vrot.slane %v463_v41, 4  ;;  %v472_v55 = vshll.u32 %v310_v40, 16  ;;  %v2340_v41 = vld [vmem:[%s2774_s9 + $0x54] sm:$0xf] }
  0x8b   : > { %v2448_v52 = vcombine.low %v1484_v42, %v1494_v47  ;;  %v1508_v53 = vsel %vm2798_vm6, %v1503_v43, %v1507_v28  ;;  %v1706_v54 = vsel %vm2788_vm5, %v1704_v45, %v1705_v39  ;;  %v468_v60 = vrot.slane %v466_v50, 5 }
  0x8c   : > { %1328 = vrot.lane.b32.xlu1 %v2640_v36, %s2702_s20  ;;  %v1518_v58 = vsel %vm2798_vm6, %v1513_v48, %v1517_v34  ;;  %v2488_v59 = vcombine.low %v1703_v44, %v1706_v54  ;;  %v476_v61 = vshrl.u32 %v310_v40, 16  ;;  %v474_v1 = vrot.slane %v472_v55, 5  ;;  %v590_v36 = vld [vmem:[%s2774_s9 + $0x5c] sm:$0x1] }
  0x8d   : > { %1599 = vrot.lane.b32.xlu0 %v2448_v52, %s2703_s21  ;;  %v2449_v0 = vcombine.low %v1508_v53, %v1518_v58  ;;  %v482_v2 = vshll.u32 %v311_v46, 16  ;;  %v2481_v3 = vrot.slane %v2467_v51, 9  ;;  %v469_v5 = vor.u32 %v468_v60, %v465_v49  ;;  %v2341_v46 = vld [vmem:[%s2774_s9 + $0x58] sm:$0xf]  ;;  %v2342_v58 = vld [vmem:[%s2774_s9 + $0x5c] sm:$0x1] }
  0x8e   : > { %v478_v6 = vrot.slane %v476_v61, 4  ;;  %v1709_v7 = vrot.slane %v2468_v56, 5  ;;  %v1712_v8 = vrot.slane %v2469_v57, 5  ;;  %v487_v11 = vshrl.u32 %v312_v62, 16  ;;  %v2343_v60 = vld [vmem:[%s2774_s9 + $0x60] sm:$0xf] }
  0x8f   : > { %v484_v10 = vrot.slane %v482_v2, 5  ;;  %v490_v12 = vshll.u32 %v312_v62, 16  ;;  %v496_v13 = vshll.u32 %v313_v63, 16  ;;  %v470_v16 = vrot.slane %v469_v5, 4  ;;  %v2345_v5 = vld [vmem:[%s2774_s9 + $0x68] sm:$0x1] }
  0x90   : > { %1601 = vrot.lane.b32.xlu1 %v2449_v0, %s2703_s21  ;;  %v479_v17 = vor.u32 %v478_v6, %v474_v1  ;;  %v1710_v18 = vsel %vm2788_vm5, %v2481_v3, %v1709_v7  ;;  %v1711_v20 = vrot.slane %v1709_v7, 4  ;;  %v489_v21 = vrot.slane %v487_v11, 4  ;;  %v2373_v11 = vld [vmem:[%s2774_s9 + $0x58] sm:$0xf] }
  0x91   : > { %1760 = vrot.lane.b32.xlu0 %v2488_v59, %s2704_s22  ;;  %v492_v22 = vrot.slane %v490_v12, 5  ;;  %v498_v23 = vrot.slane %v496_v13, 5  ;;  %v500_v24 = vshrl.u32 %v313_v63, 16  ;;  %v475_v25 = vsel %vm2798_vm6, %v470_v16, %v474_v1  ;;  %v2641_v1 = vld [vmem:[%s2774_s9 + $0x54] sm:$0xff]   ;;  %v2374_v16 = vld [vmem:[%s2774_s9 + $0x5c] sm:$0x1] }
  0x92   : > { %v480_v26 = vrot.slane %v479_v17, 4  ;;  %v1713_v27 = vsel %vm2788_vm5, %v1711_v20, %v1712_v8  ;;  %v506_v28 = vshll.u32 %v314_v4, 16  ;;  %v2286_v34 = vrot.slane %v585_v9, 9  ;;  %v3135_v61 = vpop.permute.xlu0 %791  ;;  %v3137_v62 = vpop.permute.xlu1 %793  ;;  %v2344_v4 = vld [vmem:[%s2774_s9 + $0x64] sm:$0xf] }
  0x93   : > { %v2489_v30 = vcombine.low %v1710_v18, %v1713_v27  ;;  %v493_v31 = vor.u32 %v492_v22, %v489_v21  ;;  %v502_v33 = vrot.slane %v500_v24, 4  ;;  %v662_v39 = vrot.slane %v586_v14, 5  ;;  %v2375_v22 = vld [vmem:[%s2774_s9 + $0x60] sm:$0xe] }
  0x94   : > { %v485_v37 = vsel %vm2798_vm6, %v480_v26, %v484_v10  ;;  %v508_v38 = vrot.slane %v506_v28, 5  ;;  %v665_v40 = vrot.slane %v587_v15, 5  ;;  %v2287_v45 = vrot.slane %v588_v29, 9  ;;  %v2372_v10 = vld [vmem:[%s2774_s9 + $0x54] sm:$0xe]  ;;  %v2642_v29 = vld [vmem:[%s2774_s9 + $0x60] sm:$0xff]  }
  0x95   : > { %v2278_v42 = vcombine.low %v475_v25, %v485_v37  ;;  %1762 = vrot.lane.b32.xlu0 %v2489_v30, %s2704_s22  ;;  %v494_v43 = vrot.slane %v493_v31, 4  ;;  %v503_v44 = vor.u32 %v502_v33, %v498_v23  ;;  %v663_v47 = vsel %vm2788_vm5, %v2286_v34, %v662_v39  ;;  %v2377_v28 = vld [vmem:[%s2774_s9 + $0x68] sm:$0x1] }
  0x96   : > { %v664_v48 = vrot.slane %v662_v39, 4  ;;  %v669_v49 = vrot.slane %v589_v35, 5  ;;  %v672_v50 = vrot.slane %v590_v36, 5  ;;  %v993_v53 = vshrl.u32 %v2340_v41, 16 }
  0x97   : > { %546 = vrot.lane.b32.xlu1 %v2278_v42, %s2699_s12  ;;  %v499_v51 = vsel %vm2798_vm6, %v494_v43, %v498_v23  ;;  %v504_v52 = vrot.slane %v503_v44, 4  ;;  %v996_v54 = vshll.u32 %v2340_v41, 16  ;;  %v1002_v59 = vshll.u32 %v2341_v46, 16  ;;  %v2376_v23 = vld [vmem:[%s2774_s9 + $0x64] sm:$0xf]  ;;  %v2646_v42 = vld [vmem:[%s2774_s9 + $0xc] sm:$0xff]  }
  0x98   : > { %v666_v55 = vsel %vm2788_vm5, %v664_v48, %v665_v40  ;;  %v670_v56 = vsel %vm2788_vm5, %v2287_v45, %v669_v49  ;;  %v671_v57 = vrot.slane %v669_v49, 4  ;;  %v995_v2 = vrot.slane %v993_v53, 4  ;;  %v2645_v41 = vld [vmem:[%s2774_s9] sm:$0xff]   ;;  %v2648_v43 = vld [vmem:[%s2774_s9 + $0x18] sm:$0xff]   ;;  %v2652_v49 = vld [vmem:[%s2774_s9 + $0x30] sm:$0xff]   ;;  %284 = vst.msk [vmem:[#allocation2 + $0x8] sm:$0xff] %vm282_vm7, %v2646_v42 }
  0x99   : > { %v509_v63 = vsel %vm2798_vm6, %v504_v52, %v508_v38  ;;  %v2294_v0 = vcombine.low %v663_v47, %v666_v55  ;;  %v998_v3 = vrot.slane %v996_v54, 5  ;;  %v1004_v8 = vrot.slane %v1002_v59, 5  ;;  %v2650_v44 = vld [vmem:[%s2774_s9 + $0x24] sm:$0xff]   ;;  %283 = vst.msk [vmem:[#allocation2] sm:$0xff] %vm282_vm7, %v2645_v41  ;;  %285 = vst.msk [vmem:[#allocation2 + $0x10] sm:$0xff] %vm282_vm7, %v2648_v43 }
  0x9a   : > { %v2279_v6 = vcombine.low %v499_v51, %v509_v63  ;;  %v673_v7 = vsel %vm2788_vm5, %v671_v57, %v672_v50  ;;  %v1006_v9 = vshrl.u32 %v2341_v46, 16  ;;  %v1012_v14 = vshll.u32 %v2342_v58, 16  ;;  %v2653_v50 = vld [vmem:[%s2774_s9 + $0x3c] sm:$0xff]   ;;  %v2654_v51 = vld [vmem:[%s2774_s9 + $0x48] sm:$0xff]   ;;  %v2439_v57 = vld [vmem:[%s2774_s9 + $0x64] sm:$0xf] }
  0x9b   : > { %710 = vrot.lane.b32.xlu0 %v2294_v0, %s2698_s11  ;;  %v2295_v12 = vcombine.low %v670_v56, %v673_v7  ;;  %v999_v13 = vor.u32 %v998_v3, %v995_v2  ;;  %v1017_v15 = vshrl.u32 %v2343_v60, 16  ;;  %v1020_v18 = vshll.u32 %v2343_v60, 16  ;;  %v2438_v56 = vld [vmem:[%s2774_s9 + $0x60] sm:$0xf]  ;;  %v2655_v58 = vld [vmem:[%s2774_s9 + $0x54] sm:$0xff]   ;;  %286 = vst.msk [vmem:[#allocation2 + $0x18] sm:$0xff] %vm282_vm7, %v2650_v44 }
  0x9c   : > { %548 = vrot.lane.b32.xlu1 %v2279_v6, %s2699_s12  ;;  %v1008_v17 = vrot.slane %v1006_v9, 4  ;;  %v1026_v20 = vshll.u32 %v2344_v4, 16  ;;  %v1030_v21 = vshrl.u32 %v2344_v4, 16  ;;  %v1014_v25 = vrot.slane %v1012_v14, 5  ;;  %v2441_v2 = vld [vmem:[%s2774_s9 + $0x6c] sm:$0xf] }
  0x9d   : > { %v1000_v24 = vrot.slane %v999_v13, 4  ;;  %v1019_v26 = vrot.slane %v1017_v15, 4  ;;  %v1036_v27 = vshll.u32 %v2345_v5, 16  ;;  %v1022_v31 = vrot.slane %v1020_v18, 5  ;;  %v3155_v36 = vpop.permute.xlu1 %698  ;;  %v2442_v7 = vld [vmem:[%s2774_s9 + $0x70] sm:$0xf] }
  0x9e   : > { %v1009_v30 = vor.u32 %v1008_v17, %v1004_v8  ;;  %v1028_v33 = vrot.slane %v1026_v20, 5  ;;  %v1032_v34 = vrot.slane %v1030_v21, 4  ;;  %v535_v35 = vpop.permute.xlu0 %534  ;;  %v2384_v39 = vrot.slane %v2372_v10, 9  ;;  %287 = vst.msk [vmem:[#allocation2 + $0x20] sm:$0xff] %vm282_vm7, %v2652_v49  ;;  %288 = vst.msk [vmem:[#allocation2 + $0x28] sm:$0xff] %vm282_vm7, %v2653_v50  ;;  %v2643_v21 = vld [vmem:[%s2774_s9 + $0x60] sm:$0xff]  }
  0x9f   : > { %803 = vrot.lane.b32.xlu0 %v2641_v1, %s2697_s10  ;;  %v1005_v37 = vsel %vm2798_vm6, %v1000_v24, %v1004_v8  ;;  %v1038_v38 = vrot.slane %v1036_v27, 5  ;;  %v1189_v40 = vrot.slane %v2373_v11, 5  ;;  %v1023_v46 = vor.u32 %v1022_v31, %v1019_v26  ;;  %v2440_v1 = vld [vmem:[%s2774_s9 + $0x68] sm:$0x1]  ;;  %289 = vst.msk [vmem:[#allocation2 + $0x30] sm:$0xff] %vm282_vm7, %v2654_v51  ;;  %290 = vst.msk [vmem:[#allocation2 + $0x38] sm:$0xff] %vm282_vm7, %v2655_v58 }
  0xa0   : > { %712 = vrot.lane.b32.xlu1 %v2295_v12, %s2698_s11  ;;  %v1010_v45 = vrot.slane %v1009_v30, 4  ;;  %v1033_v47 = vor.u32 %v1032_v34, %v1028_v33  ;;  %v1192_v48 = vrot.slane %v2374_v16, 5  ;;  %v2385_v54 = vrot.slane %v2375_v22, 9  ;;  %559 = vst.msk [vmem:[#allocation2] sm:$0xff] %vm558_vm8, %v535_v35  ;;  %v2443_v20 = vld [vmem:[%s2774_s9 + $0x74] sm:$0x1] }
  0xa1   : > { %v1190_v52 = vsel %vm2788_vm5, %v2384_v39, %v1189_v40  ;;  %v1191_v53 = vrot.slane %v1189_v40, 4  ;;  %v1196_v55 = vrot.slane %v2376_v23, 5  ;;  %v1024_v60 = vrot.slane %v1023_v46, 4  ;;  %723 = vst.msk [vmem:[#allocation2] sm:$0xff] %vm722_vm9, %v3155_v36  ;;  %v2470_v26 = vld [vmem:[%s2774_s9 + $0x60] sm:$0xe] }
  0xa2   : > { %v1015_v59 = vsel %vm2798_vm6, %v1010_v45, %v1014_v25  ;;  %v1034_v63 = vrot.slane %v1033_v47, 4  ;;  %v1199_v0 = vrot.slane %v2377_v28, 5  ;;  %v537_v8 = vpop.permute.xlu0 %536  ;;  %v1520_v16 = vshrl.u32 %v2438_v56, 16  ;;  %v2471_v31 = vld [vmem:[%s2774_s9 + $0x64] sm:$0xf]  ;;  %v2644_v49 = vld [vmem:[%s2774_s9 + $0x6c] sm:$0xff]  }
  0xa3   : > { %v2352_v3 = vcombine.low %v1005_v37, %v1015_v59  ;;  %v1193_v4 = vsel %vm2788_vm5, %v1191_v53, %v1192_v48  ;;  %v1197_v5 = vsel %vm2788_vm5, %v2385_v54, %v1196_v55  ;;  %v1198_v6 = vrot.slane %v1196_v55, 4  ;;  %v701_v12 = vpop.permute.xlu1 %700  ;;  %560 = vst.msk [vmem:[#allocation2 + $0x8] sm:$0xff] %vm558_vm8, %v537_v8  ;;  %v2472_v37 = vld [vmem:[%s2774_s9 + $0x68] sm:$0x1]  ;;  %v2473_v47 = vld [vmem:[%s2774_s9 + $0x6c] sm:$0xe] }
  0xa4   : > { %805 = vrot.lane.b32.xlu1 %v2642_v29, %s2697_s10  ;;  %v1029_v9 = vsel %vm2798_vm6, %v1024_v60, %v1028_v33  ;;  %v1039_v10 = vsel %vm2798_vm6, %v1034_v63, %v1038_v38  ;;  %v2392_v11 = vcombine.low %v1190_v52, %v1193_v4  ;;  %v1523_v17 = vshll.u32 %v2438_v56, 16  ;;  %724 = vst.msk [vmem:[#allocation2 + $0x8] sm:$0xff] %vm722_vm9, %v701_v12  ;;  %v2474_v48 = vld [vmem:[%s2774_s9 + $0x70] sm:$0xf]  ;;  %v2475_v53 = vld [vmem:[%s2774_s9 + $0x74] sm:$0x1] }
  0xa5   : > { %1076 = vrot.lane.b32.xlu0 %v2352_v3, %s2700_s13  ;;  %v2353_v13 = vcombine.low %v1029_v9, %v1039_v10  ;;  %v1200_v14 = vsel %vm2788_vm5, %v1198_v6, %v1199_v0  ;;  %v1529_v18 = vshll.u32 %v2439_v57, 16  ;;  %v1533_v22 = vshrl.u32 %v2439_v57, 16  ;;  %v2651_v9 = vld [vmem:[%s3386_s1 + $0x10] ss:$0 sps:$4 sm:$0x33]   ;;  %816 = vst.msk [vmem:[#allocation2] sm:$0xff] %vm815_vm10, %v3135_v61 }
  0xa6   : > { %v2393_v15 = vcombine.low %v1197_v5, %v1200_v14  ;;  %v1539_v23 = vshll.u32 %v2440_v1, 16  ;;  %v1544_v24 = vshrl.u32 %v2441_v2, 16  ;;  %v1547_v25 = vshll.u32 %v2441_v2, 16  ;;  %817 = vst.msk [vmem:[#allocation2 + $0x8] sm:$0xff] %vm815_vm10, %v3137_v62 }
  0xa7   : > { %v1522_v27 = vrot.slane %v1520_v16, 4  ;;  %v1525_v28 = vrot.slane %v1523_v17, 5  ;;  %v1531_v29 = vrot.slane %v1529_v18, 5  ;;  %v1553_v30 = vshll.u32 %v2442_v7, 16 }
  0xa8   : > { %1078 = vrot.lane.b32.xlu1 %v2353_v13, %s2700_s13  ;;  %v1535_v33 = vrot.slane %v1533_v22, 4  ;;  %v1541_v34 = vrot.slane %v1539_v23, 5  ;;  %v1546_v35 = vrot.slane %v1544_v24, 4  ;;  %v1549_v36 = vrot.slane %v1547_v25, 5 }
  0xa9   : > { %1237 = vrot.lane.b32.xlu0 %v2392_v11, %s2701_s19  ;;  %v1526_v38 = vor.u32 %v1525_v28, %v1522_v27  ;;  %v1555_v39 = vrot.slane %v1553_v30, 5  ;;  %v1557_v40 = vshrl.u32 %v2442_v7, 16  ;;  %v1563_v41 = vshll.u32 %v2443_v20, 16 }
  0xaa   : > { %v1065_v42 = vpop.permute.xlu0 %1064  ;;  %v1536_v43 = vor.u32 %v1535_v33, %v1531_v29  ;;  %v1550_v44 = vor.u32 %v1549_v36, %v1546_v35  ;;  %v2482_v45 = vrot.slane %v2470_v26, 9  ;;  %v1716_v46 = vrot.slane %v2471_v31, 5 }
  0xab   : > { %v1527_v50 = vrot.slane %v1526_v38, 4  ;;  %v1559_v51 = vrot.slane %v1557_v40, 4  ;;  %v1719_v52 = vrot.slane %v2472_v37, 5  ;;  %v1565_v56 = vrot.slane %v1563_v41, 5  ;;  %1089 = vst.msk [vmem:[#allocation2] sm:$0xff] %vm1088_vm11, %v1065_v42 }
  0xac   : > { %1239 = vrot.lane.b32.xlu1 %v2393_v15, %s2701_s19  ;;  %v1537_v54 = vrot.slane %v1536_v43, 4  ;;  %v1551_v55 = vrot.slane %v1550_v44, 4  ;;  %v1718_v57 = vrot.slane %v1716_v46, 4  ;;  %v2483_v60 = vrot.slane %v2473_v47, 9 }
  0xad   : > { %1330 = vrot.lane.b32.xlu0 %v2643_v21, %s2702_s20  ;;  %v1532_v58 = vsel %vm2798_vm6, %v1527_v50, %v1531_v29  ;;  %v1560_v59 = vor.u32 %v1559_v51, %v1555_v39  ;;  %v1723_v63 = vrot.slane %v2474_v48, 5  ;;  %v1067_v0 = vpop.permute.xlu1 %1066  ;;  %v1717_v3 = vsel %vm2788_vm5, %v2482_v45, %v1716_v46 }
  0xae   : > { %v1226_v1 = vpop.permute.xlu0 %1225  ;;  %v1542_v2 = vsel %vm2798_vm6, %v1537_v54, %v1541_v34  ;;  %v1720_v4 = vsel %vm2788_vm5, %v1718_v57, %v1719_v52  ;;  %v1726_v5 = vrot.slane %v2475_v53, 5  ;;  %v1556_v7 = vsel %vm2798_vm6, %v1551_v55, %v1555_v39  ;;  %1090 = vst.msk [vmem:[#allocation2 + $0x8] sm:$0xff] %vm1088_vm11, %v1067_v0 }
  0xaf   : > { %v2450_v6 = vcombine.low %v1532_v58, %v1542_v2  ;;  %v1561_v8 = vrot.slane %v1560_v59, 4  ;;  %v1725_v10 = vrot.slane %v1723_v63, 4  ;;  %v2490_v12 = vcombine.low %v1717_v3, %v1720_v4  ;;  %1250 = vst.msk [vmem:[#allocation2] sm:$0xff] %vm1249_vm12, %v1226_v1 }
  0xb0   : > { %1332 = vrot.lane.b32.xlu1 %v2644_v49, %s2702_s20  ;;  %v1724_v13 = vsel %vm2788_vm5, %v2483_v60, %v1723_v63  ;;  %vm1838_vm14 = vcmask 1041408   ;;  %vm1615_vm15 = vcmask 261344   ;;  %vm1776_vm0 = vcmask 294144  }
  0xb1   : > { %1603 = vrot.lane.b32.xlu0 %v2450_v6, %s2703_s21  ;;  %v1566_v11 = vsel %vm2798_vm6, %v1561_v8, %v1565_v56  ;;  %v1228_v14 = vpop.permute.xlu1 %1227  ;;  %v1727_v17 = vsel %vm2788_vm5, %v1725_v10, %v1726_v5  ;;  %2577 = vmatprep.subr.msk.bf16.mxu0 %vm1838_vm14, %v2651_v9  ;;  %v1840_v32 = vsel %vm1838_vm14, %v2651_v9, 0  ;;  %vm1813_vm1 = vcmask 293888  }
  0xb2   : > { %v1319_v15 = vpop.permute.xlu0 %1318  ;;  %v2451_v16 = vcombine.low %v1556_v7, %v1566_v11  ;;  %1251 = vst.msk [vmem:[#allocation2 + $0x8] sm:$0xff] %vm1249_vm12, %v1228_v14  ;;  %2578 = vmatprep.subr.msk.bf16.mxu1 %vm1838_vm14, %v2651_v9  ;;  %v2491_v61 = vcombine.low %v1724_v13, %v1727_v17  ;;  %2554 = vmatpush3.bf16.msra.mxu0 %v1840_v32  ;;  %vm2101_vm2 = vcmask 60416   ;;  %vm1940_vm3 = vcmask 64512  }
  0xb3   : > { %1343 = vst.msk [vmem:[#allocation2] sm:$0xff] %vm1342_vm13, %v1319_v15  ;;  %2576 = vmatpush3.bf16.msra.mxu1 %v1840_v32  ;;  %vm1979_vm4 = vcmask 57344  }
  0xb4   : > { %1605 = vrot.lane.b32.xlu1 %v2451_v16, %s2703_s21 }
  0xb5   : > { %1764 = vrot.lane.b32.xlu0 %v2490_v12, %s2704_s22  ;;  %v1321_v19 = vpop.permute.xlu1 %1320 }
  0xb6   : > { %1344 = vst.msk [vmem:[#allocation2 + $0x8] sm:$0xff] %vm1342_vm13, %v1321_v19 }
  0xb7   : > { %v1592_v62 = vpop.permute.xlu0 %1591 }
  0xb8   : > { %1766 = vrot.lane.b32.xlu1 %v2491_v61, %s2704_s22  ;;  %1616 = vst.msk [vmem:[#allocation2] sm:$0xff] %vm1615_vm15, %v1592_v62 }
  0xb9   : > { %v1594_v18 = vpop.permute.xlu1 %1593 }
  0xba   : > { %1617 = vst.msk [vmem:[#allocation2 + $0x8] sm:$0xff] %vm1615_vm15, %v1594_v18 }
  0xbb   : > { %v1753_v20 = vpop.permute.xlu0 %1752 }
  0xbc   : > { %1777 = vst.msk [vmem:[#allocation2] sm:$0xff] %vm1776_vm0, %v1753_v20 }
  0xbf   : > { %v1755_v22 = vpop.permute.xlu0 %1754 }
  0xc0   : > { %v539_v21 = vpop.permute.xlu1 %538  ;;  %1778 = vst.msk [vmem:[#allocation2 + $0x8] sm:$0xff] %vm1776_vm0, %v1755_v22 }
  0xc1   : > { %561 = vst.msk [vmem:[#allocation2 + $0x10] sm:$0xff] %vm558_vm8, %v539_v21 }
  0xc3   : > { %v1785_v23 = vld [vmem:[#allocation2] sm:$0xff] }
  0xc4   : > { %2555 = vmatprep.mubr.msk.bf16.mxu0 %vm1813_vm1, %v1785_v23 }
  0xc5   : > { %v703_v24 = vpop.permute.xlu0 %702 }
  0xc6   : > { %v541_v25 = vpop.permute.xlu1 %540  ;;  %725 = vst.msk [vmem:[#allocation2 + $0x10] sm:$0xff] %vm722_vm9, %v703_v24 }
  0xc7   : > { %562 = vst.msk [vmem:[#allocation2 + $0x18] sm:$0xff] %vm558_vm8, %v541_v25  ;;  %v1786_v26 = vld [vmem:[#allocation2 + $0x8] sm:$0xff] }
  0xc8   : > { %2556 = vmatmul.mubr.msk.bf16.vlgmr.msra.gmra.mrb[0].mxu0 %vm1813_vm1, %v1786_v26 }
  0xc9   : > { %v796_v27 = vpop.permute.xlu0 %795 }
  0xca   : > { %v705_v28 = vpop.permute.xlu1 %704  ;;  %818 = vst.msk [vmem:[#allocation2 + $0x10] sm:$0xff] %vm815_vm10, %v796_v27 }
  0xcb   : > { %726 = vst.msk [vmem:[#allocation2 + $0x18] sm:$0xff] %vm722_vm9, %v705_v28 }
  0xce   : > { %v798_v29 = vpop.permute.xlu1 %797  ;;  %v1069_v30 = vpop.permute.xlu0 %1068 }
  0xcf   : > { %819 = vst.msk [vmem:[#allocation2 + $0x18] sm:$0xff] %vm815_vm10, %v798_v29 }
  0xd0   : > { %1091 = vst.msk [vmem:[#allocation2 + $0x10] sm:$0xff] %vm1088_vm11, %v1069_v30 }
  0xd2   : > { %v1071_v31 = vpop.permute.xlu1 %1070  ;;  %v1230_v33 = vpop.permute.xlu0 %1229 }
  0xd3   : > { %1092 = vst.msk [vmem:[#allocation2 + $0x18] sm:$0xff] %vm1088_vm11, %v1071_v31 }
  0xd4   : > { %1252 = vst.msk [vmem:[#allocation2 + $0x10] sm:$0xff] %vm1249_vm12, %v1230_v33 }
  0xd6   : > { %v1232_v34 = vpop.permute.xlu1 %1231  ;;  %v1323_v35 = vpop.permute.xlu0 %1322 }
  0xd7   : > { %1253 = vst.msk [vmem:[#allocation2 + $0x18] sm:$0xff] %vm1249_vm12, %v1232_v34 }
  0xd8   : > { %1345 = vst.msk [vmem:[#allocation2 + $0x10] sm:$0xff] %vm1342_vm13, %v1323_v35 }
  0xda   : > { %v1325_v36 = vpop.permute.xlu1 %1324 }
  0xdb   : > { %1346 = vst.msk [vmem:[#allocation2 + $0x18] sm:$0xff] %vm1342_vm13, %v1325_v36  ;;  %v1596_v37 = vpop.permute.xlu0 %1595 }
  0xdc   : > { %1618 = vst.msk [vmem:[#allocation2 + $0x10] sm:$0xff] %vm1615_vm15, %v1596_v37 }
  0xde   : > { %v1598_v38 = vpop.permute.xlu1 %1597 }
  0xdf   : > { %1619 = vst.msk [vmem:[#allocation2 + $0x18] sm:$0xff] %vm1615_vm15, %v1598_v38  ;;  %v1757_v39 = vpop.permute.xlu0 %1756 }
  0xe0   : > { %1779 = vst.msk [vmem:[#allocation2 + $0x10] sm:$0xff] %vm1776_vm0, %v1757_v39 }
  0xe3   : > { %v1759_v40 = vpop.permute.xlu0 %1758 }
  0xe4   : > { %1780 = vst.msk [vmem:[#allocation2 + $0x18] sm:$0xff] %vm1776_vm0, %v1759_v40 }
  0xe5   : > { %v543_v41 = vpop.permute.xlu1 %542 }
  0xe6   : > { %563 = vst.msk [vmem:[#allocation2 + $0x20] sm:$0xff] %vm558_vm8, %v543_v41 }
  0xe7   : > { %v1787_v42 = vld [vmem:[#allocation2 + $0x10] sm:$0xff] }
  0xe8   : > { %2559 = vmatprep.mubr.msk.bf16.mxu0 %vm1813_vm1, %v1787_v42 }
  0xe9   : > { %v707_v43 = vpop.permute.xlu0 %706 }
  0xea   : > { %v545_v44 = vpop.permute.xlu1 %544  ;;  %727 = vst.msk [vmem:[#allocation2 + $0x20] sm:$0xff] %vm722_vm9, %v707_v43 }
  0xeb   : > { %564 = vst.msk [vmem:[#allocation2 + $0x28] sm:$0xff] %vm558_vm8, %v545_v44  ;;  %v1788_v45 = vld [vmem:[#allocation2 + $0x18] sm:$0xff] }
  0xec   : > { %2560 = vmatmul.mubr.msk.bf16.gmra.mrb[4].mxu0 %vm1813_vm1, %v1788_v45 }
  0xed   : > { %v800_v46 = vpop.permute.xlu0 %799 }
  0xee   : > { %v709_v47 = vpop.permute.xlu1 %708  ;;  %820 = vst.msk [vmem:[#allocation2 + $0x20] sm:$0xff] %vm815_vm10, %v800_v46 }
  0xef   : > { %728 = vst.msk [vmem:[#allocation2 + $0x28] sm:$0xff] %vm722_vm9, %v709_v47 }
  0xf2   : > { %v802_v48 = vpop.permute.xlu1 %801 }
  0xf3   : > { %821 = vst.msk [vmem:[#allocation2 + $0x28] sm:$0xff] %vm815_vm10, %v802_v48  ;;  %v1073_v49 = vpop.permute.xlu0 %1072 }
  0xf4   : > { %1093 = vst.msk [vmem:[#allocation2 + $0x20] sm:$0xff] %vm1088_vm11, %v1073_v49 }
  0xf6   : > { %v1075_v50 = vpop.permute.xlu1 %1074 }
  0xf7   : > { %1094 = vst.msk [vmem:[#allocation2 + $0x28] sm:$0xff] %vm1088_vm11, %v1075_v50  ;;  %v1234_v51 = vpop.permute.xlu0 %1233 }
  0xf8   : > { %1254 = vst.msk [vmem:[#allocation2 + $0x20] sm:$0xff] %vm1249_vm12, %v1234_v51 }
  0xfa   : > { %v1236_v52 = vpop.permute.xlu1 %1235 }
  0xfb   : > { %1255 = vst.msk [vmem:[#allocation2 + $0x28] sm:$0xff] %vm1249_vm12, %v1236_v52  ;;  %v1327_v53 = vpop.permute.xlu0 %1326 }
  0xfc   : > { %1347 = vst.msk [vmem:[#allocation2 + $0x20] sm:$0xff] %vm1342_vm13, %v1327_v53 }
  0xfe   : > { %v1329_v54 = vpop.permute.xlu1 %1328 }
  0xff   : > { %1348 = vst.msk [vmem:[#allocation2 + $0x28] sm:$0xff] %vm1342_vm13, %v1329_v54  ;;  %v1600_v55 = vpop.permute.xlu0 %1599 }
 0x100   : > { %1620 = vst.msk [vmem:[#allocation2 + $0x20] sm:$0xff] %vm1615_vm15, %v1600_v55 }
 0x102   : > { %v1602_v56 = vpop.permute.xlu1 %1601 }
 0x103   : > { %1621 = vst.msk [vmem:[#allocation2 + $0x28] sm:$0xff] %vm1615_vm15, %v1602_v56  ;;  %v1761_v57 = vpop.permute.xlu0 %1760 }
 0x104   : > { %1781 = vst.msk [vmem:[#allocation2 + $0x20] sm:$0xff] %vm1776_vm0, %v1761_v57 }
 0x107   : > { %v1763_v58 = vpop.permute.xlu0 %1762 }
 0x108   : > { %1782 = vst.msk [vmem:[#allocation2 + $0x28] sm:$0xff] %vm1776_vm0, %v1763_v58 }
 0x109   : > { %v547_v59 = vpop.permute.xlu1 %546 }
 0x10a   : > { %565 = vst.msk [vmem:[#allocation2 + $0x30] sm:$0xff] %vm558_vm8, %v547_v59 }
 0x10b   : > { %v1789_v60 = vld [vmem:[#allocation2 + $0x20] sm:$0xff] }
 0x10c   : > { %2563 = vmatprep.mubr.msk.bf16.mxu1 %vm1813_vm1, %v1789_v60 }
 0x10d   : > { %v711_v63 = vpop.permute.xlu0 %710 }
 0x10e   : > { %v549_v0 = vpop.permute.xlu1 %548  ;;  %729 = vst.msk [vmem:[#allocation2 + $0x30] sm:$0xff] %vm722_vm9, %v711_v63 }
 0x10f   : > { %566 = vst.msk [vmem:[#allocation2 + $0x38] sm:$0xff] %vm558_vm8, %v549_v0  ;;  %v1790_v1 = vld [vmem:[#allocation2 + $0x28] sm:$0xff] }
 0x110   : > { %2564 = vmatmul.mubr.msk.bf16.vlgmr.msra.gmra.mrb[0].mxu1 %vm1813_vm1, %v1790_v1 }
 0x111   : > { %v804_v2 = vpop.permute.xlu0 %803 }
 0x112   : > { %v713_v3 = vpop.permute.xlu1 %712  ;;  %822 = vst.msk [vmem:[#allocation2 + $0x30] sm:$0xff] %vm815_vm10, %v804_v2 }
 0x113   : > { %730 = vst.msk [vmem:[#allocation2 + $0x38] sm:$0xff] %vm722_vm9, %v713_v3 }
 0x116   : > { %v806_v4 = vpop.permute.xlu1 %805 }
 0x117   : > { %823 = vst.msk [vmem:[#allocation2 + $0x38] sm:$0xff] %vm815_vm10, %v806_v4  ;;  %v1077_v5 = vpop.permute.xlu0 %1076 }
 0x118   : > { %1095 = vst.msk [vmem:[#allocation2 + $0x30] sm:$0xff] %vm1088_vm11, %v1077_v5 }
 0x11a   : > { %v1079_v6 = vpop.permute.xlu1 %1078 }
 0x11b   : > { %1096 = vst.msk [vmem:[#allocation2 + $0x38] sm:$0xff] %vm1088_vm11, %v1079_v6  ;;  %v1238_v7 = vpop.permute.xlu0 %1237 }
 0x11c   : > { %1256 = vst.msk [vmem:[#allocation2 + $0x30] sm:$0xff] %vm1249_vm12, %v1238_v7 }
 0x11e   : > { %v1240_v8 = vpop.permute.xlu1 %1239 }
 0x11f   : > { %1257 = vst.msk [vmem:[#allocation2 + $0x38] sm:$0xff] %vm1249_vm12, %v1240_v8  ;;  %v1331_v9 = vpop.permute.xlu0 %1330 }
 0x120   : > { %1349 = vst.msk [vmem:[#allocation2 + $0x30] sm:$0xff] %vm1342_vm13, %v1331_v9 }
 0x122   : > { %v1333_v10 = vpop.permute.xlu1 %1332 }
 0x123   : > { %1350 = vst.msk [vmem:[#allocation2 + $0x38] sm:$0xff] %vm1342_vm13, %v1333_v10  ;;  %v1604_v11 = vpop.permute.xlu0 %1603 }
 0x124   : > { %1622 = vst.msk [vmem:[#allocation2 + $0x30] sm:$0xff] %vm1615_vm15, %v1604_v11 }
 0x126   : > { %v1606_v12 = vpop.permute.xlu1 %1605 }
 0x127   : > { %1623 = vst.msk [vmem:[#allocation2 + $0x38] sm:$0xff] %vm1615_vm15, %v1606_v12  ;;  %v1765_v13 = vpop.permute.xlu0 %1764 }
 0x128   : > { %1783 = vst.msk [vmem:[#allocation2 + $0x30] sm:$0xff] %vm1776_vm0, %v1765_v13 }
 0x12a   : > { %v1767_v14 = vpop.permute.xlu1 %1766 }
 0x12b   : > { %1784 = vst.msk [vmem:[#allocation2 + $0x38] sm:$0xff] %vm1776_vm0, %v1767_v14 }
 0x12f   : > { %v1791_v15 = vld [vmem:[#allocation2 + $0x30] sm:$0xff] }
 0x130   : > { %2567 = vmatprep.mubr.msk.bf16.mxu1 %vm1813_vm1, %v1791_v15 }
 0x132   : > { %v1792_v16 = vld [vmem:[#allocation2 + $0x38] sm:$0xff] }
 0x133   : > { %2568 = vmatmul.mubr.msk.bf16.gmra.mrb[4].mxu1 %vm1813_vm1, %v1792_v16 }
 0x19b   : > { %v2557_v17 = vpop.f32.mrb[0].mxu0 }
 0x19c   : > { %v2524_v32 = vpack.c.bf16 %v2557_v17, %v2557_v17  ;;  %v1876_v61 = vpop.f32.mrb[1].mxu0  ;;  %v1984_v20 = vmul.f32 %v2557_v17, %v2557_v17  ;;  %v1944_v28 = vsel %vm1940_vm3, %v2557_v17, 0.0 }
 0x19d   : > { %v1982_v19 = vmul.f32 %v1876_v61, %v1876_v61  ;;  %v2522_v62 = vpack.c.bf16 %v1876_v61, %v1876_v61  ;;  %v2558_v18 = vpop.f32.mrb[2].mxu0  ;;  %v1941_v23 = vsel %vm1940_vm3, %v1876_v61, 0.0 }
 0x19e   : > { %2104 = vst.msk [vmem:[%s2769_s7 + $0x8] sm:$0xf] %vm2101_vm2, %v2524_v32  ;;  %v2525_v21 = vpack.c.bf16 %v2558_v18, %v2558_v18  ;;  %v1879_v22 = vpop.f32.mrb[3].mxu0  ;;  %v1985_v30 = vmul.f32 %v2558_v18, %v2558_v18  ;;  %v2001_v35 = vsel %vm1940_vm3, %v1984_v20, 0.0  ;;  %v1946_v36 = vsel %vm1940_vm3, %v2558_v18, 0.0 }
 0x19f   : > { %2102 = vst.msk [vmem:[%s2769_s7] sm:$0xf] %vm2101_vm2, %v2522_v62  ;;  %v1942_v24 = vsel %vm1940_vm3, %v1879_v22, 0.0  ;;  %v1983_v25 = vmul.f32 %v1879_v22, %v1879_v22  ;;  %v2523_v26 = vpack.c.bf16 %v1879_v22, %v1879_v22  ;;  %v1998_v29 = vsel %vm1940_vm3, %v1982_v19, 0.0 }
 0x1a0   : > { %2105 = vst.msk [vmem:[%s2769_s7 + $0xc] sm:$0xf] %vm2101_vm2, %v2525_v21  ;;  %v1943_v27 = vadd.f32 %v1942_v24, %v1941_v23  ;;  %v2003_v39 = vsel %vm1940_vm3, %v1985_v30, 0.0 }
 0x1a1   : > { %v1999_v31 = vsel %vm1940_vm3, %v1983_v25, 0.0  ;;  %2103 = vst.msk [vmem:[%s2769_s7 + $0x4] sm:$0xf] %vm2101_vm2, %v2523_v26 }
 0x1a2   : > { %v1945_v33 = vadd.f32 %v1944_v28, %v1943_v27  ;;  %v2000_v34 = vadd.f32 %v1999_v31, %v1998_v29 }
 0x1a4   : > { %v2002_v37 = vadd.f32 %v2001_v35, %v2000_v34  ;;  %v1947_v38 = vadd.f32 %v1946_v36, %v1945_v33 }
 0x1a6   : > { %v2004_v40 = vadd.f32 %v2003_v39, %v2002_v37 }
 0x1bf   : > { %v2561_v41 = vpop.f32.mrb[4].mxu0 }
 0x1c0   : > { %v2528_v42 = vpack.c.bf16 %v2561_v41, %v2561_v41  ;;  %v1892_v43 = vpop.f32.mrb[5].mxu0  ;;  %v1988_v48 = vmul.f32 %v2561_v41, %v2561_v41  ;;  %v1952_v58 = vsel %vm1940_vm3, %v2561_v41, 0.0 }
 0x1c1   : > { %v1948_v44 = vsel %vm1940_vm3, %v1892_v43, 0.0  ;;  %v1986_v45 = vmul.f32 %v1892_v43, %v1892_v43  ;;  %v2526_v46 = vpack.c.bf16 %v1892_v43, %v1892_v43  ;;  %v2562_v47 = vpop.f32.mrb[6].mxu0 }
 0x1c2   : > { %2108 = vst.msk [vmem:[%s2769_s7 + $0x18] sm:$0xf] %vm2101_vm2, %v2528_v42  ;;  %v1949_v49 = vadd.f32 %v1948_v44, %v1947_v38  ;;  %v1895_v50 = vpop.f32.mrb[7].mxu0  ;;  %v2529_v52 = vpack.c.bf16 %v2562_v47, %v2562_v47  ;;  %v1989_v59 = vmul.f32 %v2562_v47, %v2562_v47  ;;  %v2009_v1 = vsel %vm1940_vm3, %v1988_v48, 0.0 }
 0x1c3   : > { %v2005_v51 = vsel %vm1940_vm3, %v1986_v45, 0.0  ;;  %2106 = vst.msk [vmem:[%s2769_s7 + $0x10] sm:$0xf] %vm2101_vm2, %v2526_v46  ;;  %v1950_v53 = vsel %vm1940_vm3, %v1895_v50, 0.0  ;;  %v1987_v54 = vmul.f32 %v1895_v50, %v1895_v50  ;;  %v2527_v57 = vpack.c.bf16 %v1895_v50, %v1895_v50 }
 0x1c4   : > { %v2006_v55 = vadd.f32 %v2005_v51, %v2004_v40  ;;  %v1951_v56 = vadd.f32 %v1950_v53, %v1949_v49  ;;  %2109 = vst.msk [vmem:[%s2769_s7 + $0x1c] sm:$0xf] %vm2101_vm2, %v2529_v52  ;;  %v1954_v2 = vsel %vm1940_vm3, %v2562_v47, 0.0  ;;  %v2011_v5 = vsel %vm1940_vm3, %v1989_v59, 0.0 }
 0x1c5   : > { %v2007_v60 = vsel %vm1940_vm3, %v1987_v54, 0.0  ;;  %2107 = vst.msk [vmem:[%s2769_s7 + $0x14] sm:$0xf] %vm2101_vm2, %v2527_v57 }
 0x1c6   : > { %v1953_v63 = vadd.f32 %v1952_v58, %v1951_v56  ;;  %v2008_v0 = vadd.f32 %v2007_v60, %v2006_v55 }
 0x1c8   : > { %v2010_v3 = vadd.f32 %v2009_v1, %v2008_v0  ;;  %v1955_v4 = vadd.f32 %v1954_v2, %v1953_v63 }
 0x1ca   : > { %v2012_v6 = vadd.f32 %v2011_v5, %v2010_v3 }
 0x1e3   : > { %v2565_v7 = vpop.f32.mrb[0].mxu1 }
 0x1e4   : > { %v2532_v8 = vpack.c.bf16 %v2565_v7, %v2565_v7  ;;  %v1908_v9 = vpop.f32.mrb[1].mxu1  ;;  %v1992_v14 = vmul.f32 %v2565_v7, %v2565_v7  ;;  %v1960_v21 = vsel %vm1940_vm3, %v2565_v7, 0.0 }
 0x1e5   : > { %v1956_v10 = vsel %vm1940_vm3, %v1908_v9, 0.0  ;;  %v1990_v11 = vmul.f32 %v1908_v9, %v1908_v9  ;;  %v2530_v12 = vpack.c.bf16 %v1908_v9, %v1908_v9  ;;  %v2566_v13 = vpop.f32.mrb[2].mxu1 }
 0x1e6   : > { %2112 = vst.msk [vmem:[%s2769_s7 + $0x28] sm:$0xf] %vm2101_vm2, %v2532_v8  ;;  %v1957_v15 = vadd.f32 %v1956_v10, %v1955_v4  ;;  %v1911_v16 = vpop.f32.mrb[3].mxu1  ;;  %v2533_v32 = vpack.c.bf16 %v2566_v13, %v2566_v13  ;;  %v1993_v22 = vmul.f32 %v2566_v13, %v2566_v13  ;;  %v2017_v26 = vsel %vm1940_vm3, %v1992_v14, 0.0  ;;  %v1939_v8 = vld [vmem:[%s2764_s4] sm:$0x1] }
 0x1e7   : > { %v2013_v17 = vsel %vm1940_vm3, %v1990_v11, 0.0  ;;  %2110 = vst.msk [vmem:[%s2769_s7 + $0x20] sm:$0xf] %vm2101_vm2, %v2530_v12  ;;  %v1958_v61 = vsel %vm1940_vm3, %v1911_v16, 0.0  ;;  %v1991_v19 = vmul.f32 %v1911_v16, %v1911_v16  ;;  %v2531_v20 = vpack.c.bf16 %v1911_v16, %v1911_v16  ;;  %v1981_v11 = vld [vmem:[%s2764_s4 + $0x1] sm:$0x1] }
 0x1e8   : > { %v2014_v62 = vadd.f32 %v2013_v17, %v2012_v6  ;;  %v1959_v18 = vadd.f32 %v1958_v61, %v1957_v15  ;;  %2113 = vst.msk [vmem:[%s2769_s7 + $0x2c] sm:$0xf] %vm2101_vm2, %v2533_v32  ;;  %v1962_v27 = vsel %vm1940_vm3, %v2566_v13, 0.0  ;;  %v2019_v30 = vsel %vm1940_vm3, %v1993_v22, 0.0 }
 0x1e9   : > { %v2015_v23 = vsel %vm1940_vm3, %v1991_v19, 0.0  ;;  %2111 = vst.msk [vmem:[%s2769_s7 + $0x24] sm:$0xf] %vm2101_vm2, %v2531_v20 }
 0x1ea   : > { %v1961_v24 = vadd.f32 %v1960_v21, %v1959_v18  ;;  %v2016_v25 = vadd.f32 %v2015_v23, %v2014_v62 }
 0x1ec   : > { %v2018_v28 = vadd.f32 %v2017_v26, %v2016_v25  ;;  %v1963_v29 = vadd.f32 %v1962_v27, %v1961_v24 }
 0x1ee   : > { %v2020_v31 = vadd.f32 %v2019_v30, %v2018_v28 }
 0x206   : > { %v2569_v33 = vpop.f32.mrb[4].mxu1 }
 0x207   : > { %v2536_v34 = vpack.c.bf16 %v2569_v33, %v2569_v33  ;;  %v1924_v35 = vpop.f32.mrb[5].mxu1  ;;  %v1996_v40 = vmul.f32 %v2569_v33, %v2569_v33  ;;  %v1968_v50 = vsel %vm1940_vm3, %v2569_v33, 0.0 }
 0x208   : > { %v1964_v36 = vsel %vm1940_vm3, %v1924_v35, 0.0  ;;  %v1994_v37 = vmul.f32 %v1924_v35, %v1924_v35  ;;  %v2534_v38 = vpack.c.bf16 %v1924_v35, %v1924_v35  ;;  %v2570_v39 = vpop.f32.mrb[6].mxu1 }
 0x209   : > { %2116 = vst.msk [vmem:[%s2769_s7 + $0x38] sm:$0xf] %vm2101_vm2, %v2536_v34  ;;  %v1965_v41 = vadd.f32 %v1964_v36, %v1963_v29  ;;  %v1927_v42 = vpop.f32.mrb[7].mxu1  ;;  %v2537_v44 = vpack.c.bf16 %v2570_v39, %v2570_v39  ;;  %v1997_v51 = vmul.f32 %v2570_v39, %v2570_v39  ;;  %v2025_v55 = vsel %vm1940_vm3, %v1996_v40, 0.0 }
 0x20a   : > { %v2021_v43 = vsel %vm1940_vm3, %v1994_v37, 0.0  ;;  %2114 = vst.msk [vmem:[%s2769_s7 + $0x30] sm:$0xf] %vm2101_vm2, %v2534_v38  ;;  %v1966_v45 = vsel %vm1940_vm3, %v1927_v42, 0.0  ;;  %v1995_v46 = vmul.f32 %v1927_v42, %v1927_v42  ;;  %v2535_v49 = vpack.c.bf16 %v1927_v42, %v1927_v42 }
 0x20b   : > { %v2022_v47 = vadd.f32 %v2021_v43, %v2020_v31  ;;  %v1967_v48 = vadd.f32 %v1966_v45, %v1965_v41  ;;  %2117 = vst.msk [vmem:[%s2769_s7 + $0x3c] sm:$0xf] %vm2101_vm2, %v2537_v44  ;;  %v1970_v56 = vsel %vm1940_vm3, %v2570_v39, 0.0  ;;  %v2027_v59 = vsel %vm1940_vm3, %v1997_v51, 0.0 }
 0x20c   : > { %v2023_v52 = vsel %vm1940_vm3, %v1995_v46, 0.0  ;;  %2115 = vst.msk [vmem:[%s2769_s7 + $0x34] sm:$0xf] %vm2101_vm2, %v2535_v49 }
 0x20d   : > { %v1969_v53 = vadd.f32 %v1968_v50, %v1967_v48  ;;  %v2024_v54 = vadd.f32 %v2023_v52, %v2022_v47 }
 0x20f   : > { %v1971_v57 = vadd.f32 %v1970_v56, %v1969_v53  ;;  %v2026_v58 = vadd.f32 %v2025_v55, %v2024_v54 }
 0x211   : > { %v1972_v60 = vrot.slane %v1971_v57, 4  ;;  %v2028_v63 = vadd.f32 %v2027_v59, %v2026_v58 }
 0x213   : > { %v1973_v0 = vadd.f32 %v1972_v60, %v1971_v57  ;;  %v2029_v1 = vrot.slane %v2028_v63, 4 }
 0x215   : > { %v1974_v2 = vrot.slane %v1973_v0, 2  ;;  %v2030_v3 = vadd.f32 %v2029_v1, %v2028_v63 }
 0x217   : > { %v1975_v4 = vadd.f32 %v1974_v2, %v1973_v0  ;;  %v2031_v5 = vrot.slane %v2030_v3, 2 }
 0x219   : > { %v1976_v6 = vrot.slane %v1975_v4, 1  ;;  %v2032_v7 = vadd.f32 %v2031_v5, %v2030_v3 }
 0x21b   : > { %v1977_v9 = vadd.f32 %v1976_v6, %v1975_v4  ;;  %v2033_v10 = vrot.slane %v2032_v7, 1 }
 0x21d   : > { %v1978_v12 = vadd.f32 %v1977_v9, %v1939_v8  ;;  %v2034_v13 = vadd.f32 %v2033_v10, %v2032_v7 }
 0x21f   : > { %1980 = vst.msk [vmem:[%s2764_s4] sm:$0x1] %vm1979_vm4, %v1978_v12  ;;  %v2035_v14 = vadd.f32 %v2034_v13, %v1981_v11 }
 0x221   : > { %2036 = vst.msk [vmem:[%s2764_s4 + $0x1] sm:$0x1] %vm1979_vm4, %v2035_v14 }
 0x222 PF: > { %s14_s16 = sadd.s32 1, %s2694_s16   ;;  %s3393_s12 = smov %s2686_s14 }
 0x223   : > { %p11_p8 = scmp.ge.s32.totalorder %s14_s16, 6   ;;  %s3394_s13 = smov %s2690_s15 }
 0x224   : > { %s3395_s14 = smov %s3398_s17  ;;  %s3396_s15 = smov %s3402_s18 }
 0x225   :  { %13 = sbr.rel (!%p11_p8) target bundleno = 3 (0x3), region = 77 }

</bundles_post_ra>
